<compile_context>
chip_gen: v7x
topology: tpu7x:2x2x1
jax: 0.10.0
libtpu: 0.0.40
codegen_flags: <defaults>
</compile_context>

<pallas_src>
import jax
import jax.numpy as jnp
from jax import lax
from jax.experimental import pallas as pl
from jax.experimental.pallas import tpu as pltpu

EPS = 1e-5
LANE = 128


def _vmem_limit_bytes():
    """Scoped-VMEM limit derived from the device (v7x: 64 MiB, v5e/v6e: 128 MiB)."""
    cap = 64 * 1024 * 1024  # conservative default (v7x per-TC VMEM)
    try:
        cap = int(pltpu.get_tpu_info().vmem_capacity_bytes)
    except Exception:
        pass
    return int(min(cap * 3 // 4, 100 * 1024 * 1024))


def _pick_tile_l(L, C, H, x_bytes, out_bytes, w_bytes, vmem_limit):
    """Largest L-tile (multiple of 128, or all of L) that fits in VMEM."""
    # Resident weights are double-buffered by the default BlockSpec pipeline
    # even though their block index never changes.
    weight_bytes = 2 * 2 * H * C * w_bytes
    # Per-L-column footprint: streamed x/out blocks (double buffered) + f32
    # intermediates (h / net / h1 / dx) + matmul-dtype casts of h / h1.
    per_col = 2 * C * (x_bytes + out_bytes) + 4 * (2 * C + 2 * H) + w_bytes * (C + H)
    avail = vmem_limit - weight_bytes - (2 << 20)
    if avail < per_col * LANE:
        raise ValueError(
            "ResnetBlockFC: resident weights leave no room for a 128-column "
            "tile in VMEM. TODO(synk): add hidden-dim tiling for very large "
            "size_in/size_h.")
    t = min(avail // per_col, 8192)
    t = (t // LANE) * LANE
    if L <= t:
        return int(L)                 # single full-L tile (no ragged edge)
    return int(max(LANE, t))


# --------------------------------------------------------------------------- #
# pass 1: per-channel sum / sumsq of x (bn_0 batch statistics), NCL layout
# --------------------------------------------------------------------------- #
def _make_x_stats_kernel(tile_l, l_total, need_mask):
    def kernel(x_ref, sum_ref, sq_ref):
        @pl.when(pl.program_id(1) == 0)
        def _():
            sum_ref[...] = jnp.zeros_like(sum_ref)
            sq_ref[...] = jnp.zeros_like(sq_ref)

        x = x_ref[0].astype(jnp.float32)                     # (C, tile_l)
        if need_mask:
            # zero OOB lanes of the ragged last tile (unspecified data);
            # for non-last tiles `valid >= tile_l` so the mask is all-true.
            valid = l_total - pl.program_id(1) * tile_l
            col = lax.broadcasted_iota(jnp.int32, x.shape, 1)
            x = jnp.where(col < valid, x, 0.0)
        sum_ref[0] += jnp.sum(x, axis=-1, keepdims=True)     # (C, 1)
        sq_ref[0] += jnp.sum(x * x, axis=-1, keepdims=True)

    return kernel


# --------------------------------------------------------------------------- #
# pass 2: per-channel sum / sumsq of net = fc_0(relu(bn_0(x, c))), NCL layout
# --------------------------------------------------------------------------- #
def _make_net_stats_kernel(n_t, l_valid_last, need_mask, mm_dtype):
    def accum(h, w0_ref, sum_ref, sq_ref):
        net = jnp.dot(w0_ref[...], h.astype(mm_dtype),
                      preferred_element_type=jnp.float32)    # (H, tile_l)  MXU
        sum_ref[0] += jnp.sum(net, axis=-1, keepdims=True)   # (H, 1)
        sq_ref[0] += jnp.sum(net * net, axis=-1, keepdims=True)

    def kernel(x_ref, s0_ref, b0_ref, w0_ref, sum_ref, sq_ref):
        @pl.when(pl.program_id(1) == 0)
        def _():
            sum_ref[...] = jnp.zeros_like(sum_ref)
            sq_ref[...] = jnp.zeros_like(sq_ref)

        x = x_ref[0].astype(jnp.float32)                     # (C, tile_l)
        # bn_0 folded affine (scale = gamma*rstd, bias = beta - scale*mean) + ReLU
        h = jnp.maximum(s0_ref[0] * x + b0_ref[0], 0.0)      # (C, tile_l)

        if need_mask:
            is_last = pl.program_id(1) == n_t - 1

            @pl.when(jnp.logical_not(is_last))
            def _():
                accum(h, w0_ref, sum_ref, sq_ref)

            @pl.when(is_last)
            def _():
                col = lax.broadcasted_iota(jnp.int32, h.shape, 1)
                accum(jnp.where(col < l_valid_last, h, 0.0),
                      w0_ref, sum_ref, sq_ref)
        else:
            accum(h, w0_ref, sum_ref, sq_ref)

    return kernel


# --------------------------------------------------------------------------- #
# pass 3: bn_0 + fc_0 + bn_1 + fc_1 + residual, tile-parallel, NCL layout
# --------------------------------------------------------------------------- #
def _make_compute_kernel(mm_dtype):
    def kernel(x_ref, s0_ref, b0_ref, s1_ref, b1_ref, w0_ref, w1_ref, o_ref):
        x = x_ref[0].astype(jnp.float32)                                 # (C, tile_l)
        h = jnp.maximum(s0_ref[0] * x + b0_ref[0], 0.0)
        net = jnp.dot(w0_ref[...], h.astype(mm_dtype),
                      preferred_element_type=jnp.float32)                # fc_0 (MXU)
        h1 = jnp.maximum(s1_ref[0] * net + b1_ref[0], 0.0)
        dx = jnp.dot(w1_ref[...], h1.astype(mm_dtype),
                     preferred_element_type=jnp.float32)                 # fc_1 (MXU)
        o_ref[0] = (x + dx).astype(o_ref.dtype)                          # identity shortcut
        # OOB lanes of the ragged last tile are garbage but column-local; the
        # masked output write drops them.

    return kernel


# --------------------------------------------------------------------------- #
# wrapper (PyTorch layout in / out: x (B, size_in, L), c (B, c_dim))
# --------------------------------------------------------------------------- #
def resnet_block_fc(x, c, params, *, matmul_dtype=jnp.bfloat16, tile_l=None):
    B, Cin, L = x.shape
    H, Cin_w = params['w0'].shape
    Cout = params['w1'].shape[0]
    assert Cin_w == Cin and Cout == Cin, "identity shortcut requires size_in == size_out"

    f32 = jnp.float32
    vmem_limit = _vmem_limit_bytes()
    x_bytes = jnp.dtype(x.dtype).itemsize
    w_bytes = jnp.dtype(matmul_dtype).itemsize
    if tile_l is None:
        tile_l = _pick_tile_l(L, Cin, H, x_bytes, x_bytes, w_bytes, vmem_limit)
    assert tile_l == L or tile_l % LANE == 0, "tile_l must be L or a multiple of 128"
    n_t = (L + tile_l - 1) // tile_l
    need_mask = (L % tile_l) != 0
    l_valid_last = L - (n_t - 1) * tile_l
    n_rows = float(B * L)

    # CBatchNorm1d gamma/beta: tiny (B, c_dim) matmuls stay in plain JAX.
    g0 = (c @ params['wg0'].T + params['bg0']).astype(f32)   # (B, Cin)
    b0 = (c @ params['wb0'].T + params['bb0']).astype(f32)
    g1 = (c @ params['wg1'].T + params['bg1']).astype(f32)   # (B, H)
    b1 = (c @ params['wb1'].T + params['bb1']).astype(f32)

    w0 = params['w0'].astype(matmul_dtype)                   # (H, Cin)
    w1 = params['w1'].astype(matmul_dtype)                   # (Cout, H)

    grid = (B, n_t)
    x_spec = pl.BlockSpec((1, Cin, tile_l), lambda b, t: (b, 0, t))
    out_spec = pl.BlockSpec((1, Cout, tile_l), lambda b, t: (b, 0, t))
    sb_c_spec = pl.BlockSpec((1, Cin, 1), lambda b, t: (b, 0, 0))   # per-batch scale/bias
    sb_h_spec = pl.BlockSpec((1, H, 1), lambda b, t: (b, 0, 0))
    w0_spec = pl.BlockSpec((H, Cin), lambda b, t: (0, 0))           # resident weights
    w1_spec = pl.BlockSpec((Cout, H), lambda b, t: (0, 0))
    stat_c_spec = pl.BlockSpec((1, Cin, 1), lambda b, t: (b, 0, 0))  # per-batch partials
    stat_h_spec = pl.BlockSpec((1, H, 1), lambda b, t: (b, 0, 0))

    reduce_params = pltpu.CompilerParams(
        dimension_semantics=("parallel", "arbitrary"),   # B splits across TCs on v7x
        vmem_limit_bytes=vmem_limit)
    parallel_params = pltpu.CompilerParams(
        dimension_semantics=("parallel", "parallel"),
        vmem_limit_bytes=vmem_limit)

    # ---- pass 1: bn_0 batch statistics (per-batch partials, reduced here) ---
    xsum, xsq = pl.pallas_call(
        _make_x_stats_kernel(tile_l, L, need_mask),
        out_shape=(jax.ShapeDtypeStruct((B, Cin, 1), f32),
                   jax.ShapeDtypeStruct((B, Cin, 1), f32)),
        grid=grid,
        in_specs=[x_spec],
        out_specs=[stat_c_spec, stat_c_spec],
        compiler_params=reduce_params,
    )(x)
    mean0 = jnp.sum(xsum, axis=0) / n_rows                              # (Cin, 1)
    var0 = jnp.maximum(jnp.sum(xsq, axis=0) / n_rows - mean0 * mean0, 0.0)
    rstd0 = lax.rsqrt(var0 + EPS)
    scale0 = g0[:, :, None] * rstd0[None]                               # (B, Cin, 1)
    bias0 = b0[:, :, None] - scale0 * mean0[None]

    # ---- pass 2: bn_1 batch statistics (recompute fc_0 forward per tile) ----
    nsum, nsq = pl.pallas_call(
        _make_net_stats_kernel(n_t, l_valid_last, need_mask, matmul_dtype),
        out_shape=(jax.ShapeDtypeStruct((B, H, 1), f32),
                   jax.ShapeDtypeStruct((B, H, 1), f32)),
        grid=grid,
        in_specs=[x_spec, sb_c_spec, sb_c_spec, w0_spec],
        out_specs=[stat_h_spec, stat_h_spec],
        compiler_params=reduce_params,
    )(x, scale0, bias0, w0)
    mean1 = jnp.sum(nsum, axis=0) / n_rows                              # (H, 1)
    var1 = jnp.maximum(jnp.sum(nsq, axis=0) / n_rows - mean1 * mean1, 0.0)
    rstd1 = lax.rsqrt(var1 + EPS)
    scale1 = g1[:, :, None] * rstd1[None]                               # (B, H, 1)
    bias1 = b1[:, :, None] - scale1 * mean1[None]

    # ---- pass 3: full block, tile-parallel; output in x's dtype, aliases x --
    out = pl.pallas_call(
        _make_compute_kernel(matmul_dtype),
        out_shape=jax.ShapeDtypeStruct((B, Cout, L), x.dtype),
        grid=grid,
        in_specs=[x_spec, sb_c_spec, sb_c_spec, sb_h_spec, sb_h_spec,
                  w0_spec, w1_spec],
        out_specs=out_spec,
        input_output_aliases={0: 0},
        compiler_params=parallel_params,
    )(x, scale0, bias0, scale1, bias1, w0, w1)
    return out


# --------------------------------------------------------------------------- #
# pure-JAX reference + synthetic params + test
# --------------------------------------------------------------------------- #
def reference_resnet_block_fc(x, c, params):
    """Pure-JAX reference mirroring the PyTorch forward (training-mode BN)."""
    def bn(v):  # v: (B, C, L), stats per channel over (B, L)
        mean = jnp.mean(v, axis=(0, 2), keepdims=True)
        var = jnp.mean((v - mean) ** 2, axis=(0, 2), keepdims=True)
        return (v - mean) / jnp.sqrt(var + EPS)

    g0 = c @ params['wg0'].T + params['bg0']
    b0 = c @ params['wb0'].T + params['bb0']
    g1 = c @ params['wg1'].T + params['bg1']
    b1 = c @ params['wb1'].T + params['bb1']

    h = jax.nn.relu(g0[:, :, None] * bn(x) + b0[:, :, None])
    net = jnp.einsum('hc,bcl->bhl', params['w0'], h)
    h1 = jax.nn.relu(g1[:, :, None] * bn(net) + b1[:, :, None])
    dx = jnp.einsum('oh,bhl->bol', params['w1'], h1)
    return x + dx


def init_params(key, c_dim, size_in, size_h, size_out):
    """Deterministic synthetic parameters with the module's shapes.

    Note: the original module zero-inits conv_gamma/conv_beta weights and
    fc_1; here we use small random values so the kernel compute path is
    actually exercised (forward-graph semantics unchanged).
    """
    ks = jax.random.split(key, 10)
    n = lambda k, shp: (0.1 * jax.random.normal(k, shp)).astype(jnp.float32)
    return dict(
        wg0=n(ks[0], (size_in, c_dim)), bg0=n(ks[1], (size_in,)) + 1.0,
        wb0=n(ks[2], (size_in, c_dim)), bb0=n(ks[3], (size_in,)),
        wg1=n(ks[4], (size_h, c_dim)),  bg1=n(ks[5], (size_h,)) + 1.0,
        wb1=n(ks[6], (size_h, c_dim)),  bb1=n(ks[7], (size_h,)),
        w0=n(ks[8], (size_h, size_in)),                # fc_0.weight[..., 0]
        w1=n(ks[9], (size_out, size_h)),               # fc_1.weight[..., 0]
    )


if __name__ == "__main__":
    B, c_dim, size_in = 2, 8, 32
    size_out, size_h = size_in, size_in

    key = jax.random.PRNGKey(0)
    kx, kc, kp = jax.random.split(key, 3)
    c = jax.random.normal(kc, (B, c_dim), dtype=jnp.float32)
    params = init_params(kp, c_dim, size_in, size_h, size_out)

    # case 1: f32 activations, forced tile_l=128 -> multi-tile grid with a
    # ragged last tile (exercises per-batch stats accumulation + masking).
    L1 = 200
    x1 = jax.random.normal(kx, (B, size_in, L1), dtype=jnp.float32)
    run_f32 = jax.jit(lambda xx, cc, pp: resnet_block_fc(
        xx, cc, pp, matmul_dtype=jnp.float32, tile_l=128))
    ref1 = reference_resnet_block_fc(x1, c, params)
    out1 = jax.block_until_ready(run_f32(x1, c, params))
    assert out1.shape == (B, size_out, L1) and out1.dtype == jnp.float32
    err1 = float(jnp.max(jnp.abs(out1 - ref1)))
    assert err1 < 1e-3, f"f32 path max err {err1}"

    # case 2: bf16 activations (streamed + stored in bf16), bf16 matmuls,
    # auto-derived single full-L tile (L=96, not a multiple of 128).
    L2 = 96
    x2 = jax.random.normal(jax.random.PRNGKey(1), (B, size_in, L2),
                           dtype=jnp.float32).astype(jnp.bfloat16)
    run_bf16 = jax.jit(lambda xx, cc, pp: resnet_block_fc(
        xx, cc, pp, matmul_dtype=jnp.bfloat16))
    ref2 = reference_resnet_block_fc(x2.astype(jnp.float32), c, params)
    out2 = jax.block_until_ready(run_bf16(x2, c, params))
    assert out2.shape == (B, size_out, L2) and out2.dtype == jnp.bfloat16
    err2 = float(jnp.max(jnp.abs(out2.astype(jnp.float32) - ref2)))
    assert err2 < 1e-1, f"bf16 path max err {err2}"

    print("KERNEL_OK")
</pallas_src>

<mosaic_0001>
module attributes {stable_mosaic.version = 11 : i64} {
  func.func @kernel(%arg0: i32, %arg1: i32, %arg2: memref<1x32x128xf32, #tpu.memory_space<vmem>>, %arg3: memref<1x32x1xf32, #tpu.memory_space<vmem>>, %arg4: memref<1x32x1xf32, #tpu.memory_space<vmem>>) attributes {dimension_semantics = [#tpu.dimension_semantics<parallel>, #tpu.dimension_semantics<arbitrary>], iteration_bounds = array<i64: 2, 2>, scalar_prefetch = 0 : i64, scratch_operands = 0 : i64, tpu.core_type = #tpu.core_type<tc>, window_params = [{transform_indices = @transform_0, window_bounds = array<i64: 1, 32, 128>}, {transform_indices = @transform_1, window_bounds = array<i64: 1, 32, 1>}, {transform_indices = @transform_2, window_bounds = array<i64: 1, 32, 1>}]} {
    %c0_i32 = arith.constant 0 : i32
    %0 = arith.cmpi eq, %arg1, %c0_i32 : i32
    %1 = arith.extui %0 : i1 to i32
    %c0_i32_0 = arith.constant 0 : i32
    %2 = arith.cmpi ne, %1, %c0_i32_0 : i32
    scf.if %2 {
      %cst_17 = arith.constant 0.000000e+00 : f32
      %29 = vector.broadcast %cst_17 : f32 to vector<1x32x1xf32>
      %c0_18 = arith.constant 0 : index
      %c0_19 = arith.constant 0 : index
      %c0_20 = arith.constant 0 : index
      %30 = vector.load %arg3[%c0_18, %c0_19, %c0_20] : memref<1x32x1xf32, #tpu.memory_space<vmem>>, vector<1x32x1xf32>
      tpu.vector_store %arg3[%c0_18, %c0_19, %c0_20], %29 {strides = array<i32>} : memref<1x32x1xf32, #tpu.memory_space<vmem>>, vector<1x32x1xf32>,
      %cst_21 = arith.constant 0.000000e+00 : f32
      %31 = vector.broadcast %cst_21 : f32 to vector<1x32x1xf32>
      %c0_22 = arith.constant 0 : index
      %c0_23 = arith.constant 0 : index
      %c0_24 = arith.constant 0 : index
      %32 = vector.load %arg4[%c0_22, %c0_23, %c0_24] : memref<1x32x1xf32, #tpu.memory_space<vmem>>, vector<1x32x1xf32>
      tpu.vector_store %arg4[%c0_22, %c0_23, %c0_24], %31 {strides = array<i32>} : memref<1x32x1xf32, #tpu.memory_space<vmem>>, vector<1x32x1xf32>,
    } else {
    }
    %c0 = arith.constant 0 : index
    %c0_1 = arith.constant 0 : index
    %c0_2 = arith.constant 0 : index
    %3 = vector.load %arg2[%c0, %c0_1, %c0_2] : memref<1x32x128xf32, #tpu.memory_space<vmem>>, vector<1x32x128xf32>
    %4 = vector.shape_cast %3 : vector<1x32x128xf32> to vector<32x128xf32>
    %c128_i32 = arith.constant 128 : i32
    %5 = arith.muli %arg1, %c128_i32 : i32
    %c200_i32 = arith.constant 200 : i32
    %6 = arith.subi %c200_i32, %5 : i32
    %7 = tpu.iota {dimensions = array<i32: 1>} : vector<32x128xi32>
    %8 = vector.broadcast %6 : i32 to vector<32x128xi32>
    %9 = arith.cmpi slt, %7, %8 : vector<32x128xi32>
    %cst = arith.constant 0.000000e+00 : f32
    %10 = vector.broadcast %cst : f32 to vector<32x128xf32>
    %11 = arith.select %9, %4, %10 : vector<32x128xi1>, vector<32x128xf32>
    %c0_3 = arith.constant 0 : index
    %c0_4 = arith.constant 0 : index
    %c0_5 = arith.constant 0 : index
    %12 = vector.load %arg3[%c0_3, %c0_4, %c0_5] : memref<1x32x1xf32, #tpu.memory_space<vmem>>, vector<1x32x1xf32>
    %13 = vector.shape_cast %12 : vector<1x32x1xf32> to vector<32x1xf32>
    %cst_6 = arith.constant dense<0.000000e+00> : vector<32xf32>
    %14 = vector.multi_reduction <add>, %11, %cst_6 [1] : vector<32x128xf32> to vector<32xf32>
    %15 = vector.shape_cast %14 : vector<32xf32> to vector<32x1xf32>
    %16 = arith.addf %13, %15 : vector<32x1xf32>
    %c0_7 = arith.constant 0 : index
    %c0_8 = arith.constant 0 : index
    %c0_9 = arith.constant 0 : index
    %17 = vector.load %arg3[%c0_7, %c0_8, %c0_9] : memref<1x32x1xf32, #tpu.memory_space<vmem>>, vector<1x32x1xf32>
    %18 = vector.shape_cast %17 : vector<1x32x1xf32> to vector<32x1xf32>
    %19 = vector.shape_cast %16 : vector<32x1xf32> to vector<1x32x1xf32>
    tpu.vector_store %arg3[%c0_7, %c0_8, %c0_9], %19 {strides = array<i32>} : memref<1x32x1xf32, #tpu.memory_space<vmem>>, vector<1x32x1xf32>,
    %c0_10 = arith.constant 0 : index
    %c0_11 = arith.constant 0 : index
    %c0_12 = arith.constant 0 : index
    %20 = vector.load %arg4[%c0_10, %c0_11, %c0_12] : memref<1x32x1xf32, #tpu.memory_space<vmem>>, vector<1x32x1xf32>
    %21 = vector.shape_cast %20 : vector<1x32x1xf32> to vector<32x1xf32>
    %22 = arith.mulf %11, %11 : vector<32x128xf32>
    %cst_13 = arith.constant dense<0.000000e+00> : vector<32xf32>
    %23 = vector.multi_reduction <add>, %22, %cst_13 [1] : vector<32x128xf32> to vector<32xf32>
    %24 = vector.shape_cast %23 : vector<32xf32> to vector<32x1xf32>
    %25 = arith.addf %21, %24 : vector<32x1xf32>
    %c0_14 = arith.constant 0 : index
    %c0_15 = arith.constant 0 : index
    %c0_16 = arith.constant 0 : index
    %26 = vector.load %arg4[%c0_14, %c0_15, %c0_16] : memref<1x32x1xf32, #tpu.memory_space<vmem>>, vector<1x32x1xf32>
    %27 = vector.shape_cast %26 : vector<1x32x1xf32> to vector<32x1xf32>
    %28 = vector.shape_cast %25 : vector<32x1xf32> to vector<1x32x1xf32>
    tpu.vector_store %arg4[%c0_14, %c0_15, %c0_16], %28 {strides = array<i32>} : memref<1x32x1xf32, #tpu.memory_space<vmem>>, vector<1x32x1xf32>,
    return
  }
  func.func @transform_0(%arg0: i32, %arg1: i32) -> (i32, i32, i32) {
    %c0_i32 = arith.constant 0 : i32
    %c0_i32_0 = arith.constant 0 : i32
    return %arg0, %c0_i32, %arg1 : i32, i32, i32
  }
  func.func @transform_1(%arg0: i32, %arg1: i32) -> (i32, i32, i32) {
    %c0_i32 = arith.constant 0 : i32
    %c0_i32_0 = arith.constant 0 : i32
    %c0_i32_1 = arith.constant 0 : i32
    return %arg0, %c0_i32, %c0_i32_0 : i32, i32, i32
  }
  func.func @transform_2(%arg0: i32, %arg1: i32) -> (i32, i32, i32) {
    %c0_i32 = arith.constant 0 : i32
    %c0_i32_0 = arith.constant 0 : i32
    %c0_i32_1 = arith.constant 0 : i32
    return %arg0, %c0_i32, %c0_i32_0 : i32, i32, i32
  }
}

module attributes {stable_mosaic.version = 11 : i64} {
  func.func @kernel(%arg0: i32, %arg1: i32, %arg2: memref<1x32x128xf32, #tpu.memory_space<vmem>>, %arg3: memref<1x32x1xf32, #tpu.memory_space<vmem>>, %arg4: memref<1x32x1xf32, #tpu.memory_space<vmem>>, %arg5: memref<32x32xf32, #tpu.memory_space<vmem>>, %arg6: memref<1x32x1xf32, #tpu.memory_space<vmem>>, %arg7: memref<1x32x1xf32, #tpu.memory_space<vmem>>) attributes {dimension_semantics = [#tpu.dimension_semantics<parallel>, #tpu.dimension_semantics<arbitrary>], iteration_bounds = array<i64: 2, 2>, scalar_prefetch = 0 : i64, scratch_operands = 0 : i64, tpu.core_type = #tpu.core_type<tc>, window_params = [{transform_indices = @transform_0, window_bounds = array<i64: 1, 32, 128>}, {transform_indices = @transform_1, window_bounds = array<i64: 1, 32, 1>}, {transform_indices = @transform_2, window_bounds = array<i64: 1, 32, 1>}, {pipeline_mode = #tpu.pipeline_mode<synchronous>, transform_indices = @transform_3, window_bounds = array<i64: 32, 32>}, {transform_indices = @transform_4, window_bounds = array<i64: 1, 32, 1>}, {transform_indices = @transform_5, window_bounds = array<i64: 1, 32, 1>}]} {
    %c0_i32 = arith.constant 0 : i32
    %0 = arith.cmpi eq, %arg1, %c0_i32 : i32
    %1 = arith.extui %0 : i1 to i32
    %c0_i32_0 = arith.constant 0 : i32
    %2 = arith.cmpi ne, %1, %c0_i32_0 : i32
    scf.if %2 {
      %cst_11 = arith.constant 0.000000e+00 : f32
      %21 = vector.broadcast %cst_11 : f32 to vector<1x32x1xf32>
      %c0_12 = arith.constant 0 : index
      %c0_13 = arith.constant 0 : index
      %c0_14 = arith.constant 0 : index
      %22 = vector.load %arg6[%c0_12, %c0_13, %c0_14] : memref<1x32x1xf32, #tpu.memory_space<vmem>>, vector<1x32x1xf32>
      tpu.vector_store %arg6[%c0_12, %c0_13, %c0_14], %21 {strides = array<i32>} : memref<1x32x1xf32, #tpu.memory_space<vmem>>, vector<1x32x1xf32>,
      %cst_15 = arith.constant 0.000000e+00 : f32
      %23 = vector.broadcast %cst_15 : f32 to vector<1x32x1xf32>
      %c0_16 = arith.constant 0 : index
      %c0_17 = arith.constant 0 : index
      %c0_18 = arith.constant 0 : index
      %24 = vector.load %arg7[%c0_16, %c0_17, %c0_18] : memref<1x32x1xf32, #tpu.memory_space<vmem>>, vector<1x32x1xf32>
      tpu.vector_store %arg7[%c0_16, %c0_17, %c0_18], %23 {strides = array<i32>} : memref<1x32x1xf32, #tpu.memory_space<vmem>>, vector<1x32x1xf32>,
    } else {
    }
    %c0 = arith.constant 0 : index
    %c0_1 = arith.constant 0 : index
    %c0_2 = arith.constant 0 : index
    %3 = vector.load %arg2[%c0, %c0_1, %c0_2] : memref<1x32x128xf32, #tpu.memory_space<vmem>>, vector<1x32x128xf32>
    %4 = vector.shape_cast %3 : vector<1x32x128xf32> to vector<32x128xf32>
    %c0_3 = arith.constant 0 : index
    %c0_4 = arith.constant 0 : index
    %c0_5 = arith.constant 0 : index
    %5 = vector.load %arg3[%c0_3, %c0_4, %c0_5] : memref<1x32x1xf32, #tpu.memory_space<vmem>>, vector<1x32x1xf32>
    %6 = vector.shape_cast %5 : vector<1x32x1xf32> to vector<32x1xf32>
    %7 = vector.broadcast %6 : vector<32x1xf32> to vector<32x128xf32>
    %8 = arith.mulf %7, %4 : vector<32x128xf32>
    %c0_6 = arith.constant 0 : index
    %c0_7 = arith.constant 0 : index
    %c0_8 = arith.constant 0 : index
    %9 = vector.load %arg4[%c0_6, %c0_7, %c0_8] : memref<1x32x1xf32, #tpu.memory_space<vmem>>, vector<1x32x1xf32>
    %10 = vector.shape_cast %9 : vector<1x32x1xf32> to vector<32x1xf32>
    %11 = vector.broadcast %10 : vector<32x1xf32> to vector<32x128xf32>
    %12 = arith.addf %8, %11 : vector<32x128xf32>
    %cst = arith.constant 0.000000e+00 : f32
    %13 = vector.broadcast %cst : f32 to vector<32x128xf32>
    %14 = arith.maximumf %12, %13 : vector<32x128xf32>
    %c1_i32 = arith.constant 1 : i32
    %15 = arith.cmpi eq, %arg1, %c1_i32 : i32
    %true = arith.constant true
    %16 = arith.xori %15, %true : i1
    %17 = arith.extui %16 : i1 to i32
    %c0_i32_9 = arith.constant 0 : i32
    %18 = arith.cmpi ne, %17, %c0_i32_9 : i32
    scf.if %18 {
      %c0_11 = arith.constant 0 : index
      %c0_12 = arith.constant 0 : index
      %21 = vector.load %arg5[%c0_11, %c0_12] : memref<32x32xf32, #tpu.memory_space<vmem>>, vector<32x32xf32>
      %cst_13 = arith.constant dense<0.000000e+00> : vector<32x128xf32>
      %22 = tpu.matmul %21, %14, %cst_13 {dimension_numbers = #tpu.dot_dimension_numbers<[1], [0], [0], [1], [0, 0, 1, 1], [], []>} : vector<32x32xf32>, vector<32x128xf32>, vector<32x128xf32> -> vector<32x128xf32>
      %c0_14 = arith.constant 0 : index
      %c0_15 = arith.constant 0 : index
      %c0_16 = arith.constant 0 : index
      %23 = vector.load %arg6[%c0_14, %c0_15, %c0_16] : memref<1x32x1xf32, #tpu.memory_space<vmem>>, vector<1x32x1xf32>
      %24 = vector.shape_cast %23 : vector<1x32x1xf32> to vector<32x1xf32>
      %cst_17 = arith.constant dense<0.000000e+00> : vector<32xf32>
      %25 = vector.multi_reduction <add>, %22, %cst_17 [1] : vector<32x128xf32> to vector<32xf32>
      %26 = vector.shape_cast %25 : vector<32xf32> to vector<32x1xf32>
      %27 = arith.addf %24, %26 : vector<32x1xf32>
      %c0_18 = arith.constant 0 : index
      %c0_19 = arith.constant 0 : index
      %c0_20 = arith.constant 0 : index
      %28 = vector.load %arg6[%c0_18, %c0_19, %c0_20] : memref<1x32x1xf32, #tpu.memory_space<vmem>>, vector<1x32x1xf32>
      %29 = vector.shape_cast %28 : vector<1x32x1xf32> to vector<32x1xf32>
      %30 = vector.shape_cast %27 : vector<32x1xf32> to vector<1x32x1xf32>
      tpu.vector_store %arg6[%c0_18, %c0_19, %c0_20], %30 {strides = array<i32>} : memref<1x32x1xf32, #tpu.memory_space<vmem>>, vector<1x32x1xf32>,
      %c0_21 = arith.constant 0 : index
      %c0_22 = arith.constant 0 : index
      %c0_23 = arith.constant 0 : index
      %31 = vector.load %arg7[%c0_21, %c0_22, %c0_23] : memref<1x32x1xf32, #tpu.memory_space<vmem>>, vector<1x32x1xf32>
      %32 = vector.shape_cast %31 : vector<1x32x1xf32> to vector<32x1xf32>
      %33 = arith.mulf %22, %22 : vector<32x128xf32>
      %cst_24 = arith.constant dense<0.000000e+00> : vector<32xf32>
      %34 = vector.multi_reduction <add>, %33, %cst_24 [1] : vector<32x128xf32> to vector<32xf32>
      %35 = vector.shape_cast %34 : vector<32xf32> to vector<32x1xf32>
      %36 = arith.addf %32, %35 : vector<32x1xf32>
      %c0_25 = arith.constant 0 : index
      %c0_26 = arith.constant 0 : index
      %c0_27 = arith.constant 0 : index
      %37 = vector.load %arg7[%c0_25, %c0_26, %c0_27] : memref<1x32x1xf32, #tpu.memory_space<vmem>>, vector<1x32x1xf32>
      %38 = vector.shape_cast %37 : vector<1x32x1xf32> to vector<32x1xf32>
      %39 = vector.shape_cast %36 : vector<32x1xf32> to vector<1x32x1xf32>
      tpu.vector_store %arg7[%c0_25, %c0_26, %c0_27], %39 {strides = array<i32>} : memref<1x32x1xf32, #tpu.memory_space<vmem>>, vector<1x32x1xf32>,
    } else {
    }
    %19 = arith.extui %15 : i1 to i32
    %c0_i32_10 = arith.constant 0 : i32
    %20 = arith.cmpi ne, %19, %c0_i32_10 : i32
    scf.if %20 {
      %21 = tpu.iota {dimensions = array<i32: 1>} : vector<32x128xi32>
      %c72_i32 = arith.constant 72 : i32
      %22 = vector.broadcast %c72_i32 : i32 to vector<32x128xi32>
      %23 = arith.cmpi slt, %21, %22 : vector<32x128xi32>
      %cst_11 = arith.constant 0.000000e+00 : f32
      %24 = vector.broadcast %cst_11 : f32 to vector<32x128xf32>
      %25 = arith.select %23, %14, %24 : vector<32x128xi1>, vector<32x128xf32>
      %c0_12 = arith.constant 0 : index
      %c0_13 = arith.constant 0 : index
      %26 = vector.load %arg5[%c0_12, %c0_13] : memref<32x32xf32, #tpu.memory_space<vmem>>, vector<32x32xf32>
      %cst_14 = arith.constant dense<0.000000e+00> : vector<32x128xf32>
      %27 = tpu.matmul %26, %25, %cst_14 {dimension_numbers = #tpu.dot_dimension_numbers<[1], [0], [0], [1], [0, 0, 1, 1], [], []>} : vector<32x32xf32>, vector<32x128xf32>, vector<32x128xf32> -> vector<32x128xf32>
      %c0_15 = arith.constant 0 : index
      %c0_16 = arith.constant 0 : index
      %c0_17 = arith.constant 0 : index
      %28 = vector.load %arg6[%c0_15, %c0_16, %c0_17] : memref<1x32x1xf32, #tpu.memory_space<vmem>>, vector<1x32x1xf32>
      %29 = vector.shape_cast %28 : vector<1x32x1xf32> to vector<32x1xf32>
      %cst_18 = arith.constant dense<0.000000e+00> : vector<32xf32>
      %30 = vector.multi_reduction <add>, %27, %cst_18 [1] : vector<32x128xf32> to vector<32xf32>
      %31 = vector.shape_cast %30 : vector<32xf32> to vector<32x1xf32>
      %32 = arith.addf %29, %31 : vector<32x1xf32>
      %c0_19 = arith.constant 0 : index
      %c0_20 = arith.constant 0 : index
      %c0_21 = arith.constant 0 : index
      %33 = vector.load %arg6[%c0_19, %c0_20, %c0_21] : memref<1x32x1xf32, #tpu.memory_space<vmem>>, vector<1x32x1xf32>
      %34 = vector.shape_cast %33 : vector<1x32x1xf32> to vector<32x1xf32>
      %35 = vector.shape_cast %32 : vector<32x1xf32> to vector<1x32x1xf32>
      tpu.vector_store %arg6[%c0_19, %c0_20, %c0_21], %35 {strides = array<i32>} : memref<1x32x1xf32, #tpu.memory_space<vmem>>, vector<1x32x1xf32>,
      %c0_22 = arith.constant 0 : index
      %c0_23 = arith.constant 0 : index
      %c0_24 = arith.constant 0 : index
      %36 = vector.load %arg7[%c0_22, %c0_23, %c0_24] : memref<1x32x1xf32, #tpu.memory_space<vmem>>, vector<1x32x1xf32>
      %37 = vector.shape_cast %36 : vector<1x32x1xf32> to vector<32x1xf32>
      %38 = arith.mulf %27, %27 : vector<32x128xf32>
      %cst_25 = arith.constant dense<0.000000e+00> : vector<32xf32>
      %39 = vector.multi_reduction <add>, %38, %cst_25 [1] : vector<32x128xf32> to vector<32xf32>
      %40 = vector.shape_cast %39 : vector<32xf32> to vector<32x1xf32>
      %41 = arith.addf %37, %40 : vector<32x1xf32>
      %c0_26 = arith.constant 0 : index
      %c0_27 = arith.constant 0 : index
      %c0_28 = arith.constant 0 : index
      %42 = vector.load %arg7[%c0_26, %c0_27, %c0_28] : memref<1x32x1xf32, #tpu.memory_space<vmem>>, vector<1x32x1xf32>
      %43 = vector.shape_cast %42 : vector<1x32x1xf32> to vector<32x1xf32>
      %44 = vector.shape_cast %41 : vector<32x1xf32> to vector<1x32x1xf32>
      tpu.vector_store %arg7[%c0_26, %c0_27, %c0_28], %44 {strides = array<i32>} : memref<1x32x1xf32, #tpu.memory_space<vmem>>, vector<1x32x1xf32>,
    } else {
    }
    return
  }
  func.func @transform_0(%arg0: i32, %arg1: i32) -> (i32, i32, i32) {
    %c0_i32 = arith.constant 0 : i32
    %c0_i32_0 = arith.constant 0 : i32
    return %arg0, %c0_i32, %arg1 : i32, i32, i32
  }
  func.func @transform_1(%arg0: i32, %arg1: i32) -> (i32, i32, i32) {
    %c0_i32 = arith.constant 0 : i32
    %c0_i32_0 = arith.constant 0 : i32
    %c0_i32_1 = arith.constant 0 : i32
    return %arg0, %c0_i32, %c0_i32_0 : i32, i32, i32
  }
  func.func @transform_2(%arg0: i32, %arg1: i32) -> (i32, i32, i32) {
    %c0_i32 = arith.constant 0 : i32
    %c0_i32_0 = arith.constant 0 : i32
    %c0_i32_1 = arith.constant 0 : i32
    return %arg0, %c0_i32, %c0_i32_0 : i32, i32, i32
  }
  func.func @transform_3(%arg0: i32, %arg1: i32) -> (i32, i32) {
    %c0_i32 = arith.constant 0 : i32
    %c0_i32_0 = arith.constant 0 : i32
    %c0_i32_1 = arith.constant 0 : i32
    return %c0_i32, %c0_i32_0 : i32, i32
  }
  func.func @transform_4(%arg0: i32, %arg1: i32) -> (i32, i32, i32) {
    %c0_i32 = arith.constant 0 : i32
    %c0_i32_0 = arith.constant 0 : i32
    %c0_i32_1 = arith.constant 0 : i32
    return %arg0, %c0_i32, %c0_i32_0 : i32, i32, i32
  }
  func.func @transform_5(%arg0: i32, %arg1: i32) -> (i32, i32, i32) {
    %c0_i32 = arith.constant 0 : i32
    %c0_i32_0 = arith.constant 0 : i32
    %c0_i32_1 = arith.constant 0 : i32
    return %arg0, %c0_i32, %c0_i32_0 : i32, i32, i32
  }
}

module attributes {stable_mosaic.version = 11 : i64} {
  func.func @kernel(%arg0: i32, %arg1: i32, %arg2: memref<1x32x128xf32, #tpu.memory_space<vmem>>, %arg3: memref<1x32x1xf32, #tpu.memory_space<vmem>>, %arg4: memref<1x32x1xf32, #tpu.memory_space<vmem>>, %arg5: memref<1x32x1xf32, #tpu.memory_space<vmem>>, %arg6: memref<1x32x1xf32, #tpu.memory_space<vmem>>, %arg7: memref<32x32xf32, #tpu.memory_space<vmem>>, %arg8: memref<32x32xf32, #tpu.memory_space<vmem>>, %arg9: memref<1x32x128xf32, #tpu.memory_space<vmem>>) attributes {dimension_semantics = [#tpu.dimension_semantics<parallel>, #tpu.dimension_semantics<parallel>], iteration_bounds = array<i64: 2, 2>, scalar_prefetch = 0 : i64, scratch_operands = 0 : i64, tpu.core_type = #tpu.core_type<tc>, window_params = [{transform_indices = @transform_0, window_bounds = array<i64: 1, 32, 128>}, {transform_indices = @transform_1, window_bounds = array<i64: 1, 32, 1>}, {transform_indices = @transform_2, window_bounds = array<i64: 1, 32, 1>}, {transform_indices = @transform_3, window_bounds = array<i64: 1, 32, 1>}, {transform_indices = @transform_4, window_bounds = array<i64: 1, 32, 1>}, {pipeline_mode = #tpu.pipeline_mode<synchronous>, transform_indices = @transform_5, window_bounds = array<i64: 32, 32>}, {pipeline_mode = #tpu.pipeline_mode<synchronous>, transform_indices = @transform_6, window_bounds = array<i64: 32, 32>}, {transform_indices = @transform_7, window_bounds = array<i64: 1, 32, 128>}]} {
    %c0 = arith.constant 0 : index
    %c0_0 = arith.constant 0 : index
    %c0_1 = arith.constant 0 : index
    %0 = vector.load %arg2[%c0, %c0_0, %c0_1] : memref<1x32x128xf32, #tpu.memory_space<vmem>>, vector<1x32x128xf32>
    %1 = vector.shape_cast %0 : vector<1x32x128xf32> to vector<32x128xf32>
    %c0_2 = arith.constant 0 : index
    %c0_3 = arith.constant 0 : index
    %c0_4 = arith.constant 0 : index
    %2 = vector.load %arg3[%c0_2, %c0_3, %c0_4] : memref<1x32x1xf32, #tpu.memory_space<vmem>>, vector<1x32x1xf32>
    %3 = vector.shape_cast %2 : vector<1x32x1xf32> to vector<32x1xf32>
    %4 = vector.broadcast %3 : vector<32x1xf32> to vector<32x128xf32>
    %5 = arith.mulf %4, %1 : vector<32x128xf32>
    %c0_5 = arith.constant 0 : index
    %c0_6 = arith.constant 0 : index
    %c0_7 = arith.constant 0 : index
    %6 = vector.load %arg4[%c0_5, %c0_6, %c0_7] : memref<1x32x1xf32, #tpu.memory_space<vmem>>, vector<1x32x1xf32>
    %7 = vector.shape_cast %6 : vector<1x32x1xf32> to vector<32x1xf32>
    %8 = vector.broadcast %7 : vector<32x1xf32> to vector<32x128xf32>
    %9 = arith.addf %5, %8 : vector<32x128xf32>
    %cst = arith.constant 0.000000e+00 : f32
    %10 = vector.broadcast %cst : f32 to vector<32x128xf32>
    %11 = arith.maximumf %9, %10 : vector<32x128xf32>
    %c0_8 = arith.constant 0 : index
    %c0_9 = arith.constant 0 : index
    %12 = vector.load %arg7[%c0_8, %c0_9] : memref<32x32xf32, #tpu.memory_space<vmem>>, vector<32x32xf32>
    %cst_10 = arith.constant dense<0.000000e+00> : vector<32x128xf32>
    %13 = tpu.matmul %12, %11, %cst_10 {dimension_numbers = #tpu.dot_dimension_numbers<[1], [0], [0], [1], [0, 0, 1, 1], [], []>} : vector<32x32xf32>, vector<32x128xf32>, vector<32x128xf32> -> vector<32x128xf32>
    %c0_11 = arith.constant 0 : index
    %c0_12 = arith.constant 0 : index
    %c0_13 = arith.constant 0 : index
    %14 = vector.load %arg5[%c0_11, %c0_12, %c0_13] : memref<1x32x1xf32, #tpu.memory_space<vmem>>, vector<1x32x1xf32>
    %15 = vector.shape_cast %14 : vector<1x32x1xf32> to vector<32x1xf32>
    %16 = vector.broadcast %15 : vector<32x1xf32> to vector<32x128xf32>
    %17 = arith.mulf %16, %13 : vector<32x128xf32>
    %c0_14 = arith.constant 0 : index
    %c0_15 = arith.constant 0 : index
    %c0_16 = arith.constant 0 : index
    %18 = vector.load %arg6[%c0_14, %c0_15, %c0_16] : memref<1x32x1xf32, #tpu.memory_space<vmem>>, vector<1x32x1xf32>
    %19 = vector.shape_cast %18 : vector<1x32x1xf32> to vector<32x1xf32>
    %20 = vector.broadcast %19 : vector<32x1xf32> to vector<32x128xf32>
    %21 = arith.addf %17, %20 : vector<32x128xf32>
    %cst_17 = arith.constant 0.000000e+00 : f32
    %22 = vector.broadcast %cst_17 : f32 to vector<32x128xf32>
    %23 = arith.maximumf %21, %22 : vector<32x128xf32>
    %c0_18 = arith.constant 0 : index
    %c0_19 = arith.constant 0 : index
    %24 = vector.load %arg8[%c0_18, %c0_19] : memref<32x32xf32, #tpu.memory_space<vmem>>, vector<32x32xf32>
    %cst_20 = arith.constant dense<0.000000e+00> : vector<32x128xf32>
    %25 = tpu.matmul %24, %23, %cst_20 {dimension_numbers = #tpu.dot_dimension_numbers<[1], [0], [0], [1], [0, 0, 1, 1], [], []>} : vector<32x32xf32>, vector<32x128xf32>, vector<32x128xf32> -> vector<32x128xf32>
    %26 = arith.addf %1, %25 : vector<32x128xf32>
    %c0_21 = arith.constant 0 : index
    %c0_22 = arith.constant 0 : index
    %c0_23 = arith.constant 0 : index
    %27 = vector.load %arg9[%c0_21, %c0_22, %c0_23] : memref<1x32x128xf32, #tpu.memory_space<vmem>>, vector<1x32x128xf32>
    %28 = vector.shape_cast %27 : vector<1x32x128xf32> to vector<32x128xf32>
    %29 = vector.shape_cast %26 : vector<32x128xf32> to vector<1x32x128xf32>
    tpu.vector_store %arg9[%c0_21, %c0_22, %c0_23], %29 {strides = array<i32>} : memref<1x32x128xf32, #tpu.memory_space<vmem>>, vector<1x32x128xf32>,
    return
  }
  func.func @transform_0(%arg0: i32, %arg1: i32) -> (i32, i32, i32) {
    %c0_i32 = arith.constant 0 : i32
    %c0_i32_0 = arith.constant 0 : i32
    return %arg0, %c0_i32, %arg1 : i32, i32, i32
  }
  func.func @transform_1(%arg0: i32, %arg1: i32) -> (i32, i32, i32) {
    %c0_i32 = arith.constant 0 : i32
    %c0_i32_0 = arith.constant 0 : i32
    %c0_i32_1 = arith.constant 0 : i32
    return %arg0, %c0_i32, %c0_i32_0 : i32, i32, i32
  }
  func.func @transform_2(%arg0: i32, %arg1: i32) -> (i32, i32, i32) {
    %c0_i32 = arith.constant 0 : i32
    %c0_i32_0 = arith.constant 0 : i32
    %c0_i32_1 = arith.constant 0 : i32
    return %arg0, %c0_i32, %c0_i32_0 : i32, i32, i32
  }
  func.func @transform_3(%arg0: i32, %arg1: i32) -> (i32, i32, i32) {
    %c0_i32 = arith.constant 0 : i32
    %c0_i32_0 = arith.constant 0 : i32
    %c0_i32_1 = arith.constant 0 : i32
    return %arg0, %c0_i32, %c0_i32_0 : i32, i32, i32
  }
  func.func @transform_4(%arg0: i32, %arg1: i32) -> (i32, i32, i32) {
    %c0_i32 = arith.constant 0 : i32
    %c0_i32_0 = arith.constant 0 : i32
    %c0_i32_1 = arith.constant 0 : i32
    return %arg0, %c0_i32, %c0_i32_0 : i32, i32, i32
  }
  func.func @transform_5(%arg0: i32, %arg1: i32) -> (i32, i32) {
    %c0_i32 = arith.constant 0 : i32
    %c0_i32_0 = arith.constant 0 : i32
    %c0_i32_1 = arith.constant 0 : i32
    return %c0_i32, %c0_i32_0 : i32, i32
  }
  func.func @transform_6(%arg0: i32, %arg1: i32) -> (i32, i32) {
    %c0_i32 = arith.constant 0 : i32
    %c0_i32_0 = arith.constant 0 : i32
    %c0_i32_1 = arith.constant 0 : i32
    return %c0_i32, %c0_i32_0 : i32, i32
  }
  func.func @transform_7(%arg0: i32, %arg1: i32) -> (i32, i32, i32) {
    %c0_i32 = arith.constant 0 : i32
    %c0_i32_0 = arith.constant 0 : i32
    return %arg0, %c0_i32, %arg1 : i32, i32, i32
  }
}

</mosaic_0001>

<bundles_post_ra>
// kernel: _lambda_.3
= control target key start
LH: loop header
LB: loop body
LE: loop exit
PB: predicated region body
PF: predicated region fallthrough
CT: control target
= control target key end

     0   :  { %s546_s9 = smov 0   ;;  %s548_s10 = smov 0   ;;  %s676_s0 = inlined_call_operand.vmem [shape: f32[2,32,200], index: 0, kind: input, shape index: {}]   ;;  %s677_s1 = inlined_call_operand.vmem [shape: f32[2,32,1], index: 1, kind: output, shape index: {0}]   ;;  %s678_s2 = inlined_call_operand.vmem [shape: f32[2,32,1], index: 2, kind: output, shape index: {1}]  }
   0x1   :  { %s550_s11 = smov 0   ;;  %s552_s12 = smov 0  }
   0x2   :  { %s554_s13 = smov 0   ;;  %s556_s14 = smov 0  }
   0x3   :  { %s558_s15 = smov 0  }
   0x4 LB: > { %s22_s16 = sadd.s32 1, %s520_s13  ;;  %s25_s17 = sadd.s32 1, %s524_s14  ;;  %s528_s15 = sphi %s558_s15, %s13_s15   ;;  %s524_s14 = sphi %s556_s14, %s684_s14   ;;  %s520_s13 = sphi %s554_s13, %s683_s13   ;;  %s516_s12 = sphi %s552_s12, %s682_s12   ;;  %s512_s11 = sphi %s550_s11, %s681_s11   ;;  %s508_s10 = sphi %s548_s10, %s680_s10   ;;  %s504_s9 = sphi %s546_s9, %s679_s9  }
   0x5   : > { %p23_p0 = scmp.ge.s32.totalorder %s22_s16, 2  ;;  %p41_p1 = scmp.ne.s32.totalorder %s508_s10, %s504_s9 }
   0x6   : > { %p42_p2 = scmp.eq.s32.totalorder %s528_s15, 0  ;;  %s34_s21 = sadd.s32 1, %s508_s10 }
   0x7   : > { %s686_s16 = smov (%p23_p0, %s22_s16), 0  ;;  %s688_s17 = smov (!%p23_p0, %s25_s17), %s524_s14 }
   0x8   : > { %p43_p3 = por %p42_p2, %p41_p1  ;;  %p27_p4 = scmp.ge.s32.totalorder %s688_s17, 2 }
   0x9   : > { %s30_s18 = ssub.s32 %s520_s13, %s686_s16  ;;  %p401_p6 = scmp.ge.s32.totalorder %s528_s15, 4 }
   0xa   : > { %s690_s17 = smov (%p27_p4, %s688_s17), 0 }
   0xb   : > { %s29_s19 = ssub.s32 %s524_s14, %s690_s17  ;;  %119 = sbr.rel (%p401_p6) target bundleno = 26 (0x1a), region = 16 }
   0xc   : > { %s31_s20 = sor.u32 %s30_s18, %s29_s19 }
   0xd   : > { %p32_p5 = scmp.eq.s32.totalorder %s31_s20, 0 }
   0xf   : > { %s597_s22 = scalar_select %p32_p5, %s508_s10, %s34_s21  }
  0x12   : > { %122 = sbr.rel (!%p43_p3) target bundleno = 26 (0x1a), region = 20  ;;  %s124_s23 = sand.u32 (%p43_p3), 1, %s508_s10  }
  0x13   : > { %s403_s24 = sshll.u32 (%p43_p3), %s524_s14, 3  ;;  %s402_s25 = sshll.u32 (%p43_p3), %s124_s23, 5 }
  0x14   : > { %s128_s26 = sadd.s32 (%p43_p3), %s520_s13, %s403_s24  ;;  %s126_s3 = scalar_lea.vmem (%p43_p3), [#allocation2], %s402_s25 }
  0x15   : > { %s404_s27 = sshll.u32 (%p43_p3), %s128_s26, 3 }
  0x16   : > { %s130_s30 = scalar_lea.vmem (%p43_p3), %s676_s0, %s404_s27 }
  0x17   : > { %v164_v0 = vld [vmem:[%s130_s30] sm:$0xff] (%p43_p3)  ;;  %v166_v1 = vld [vmem:[%s130_s30 + $0x10] sm:$0xff] (%p43_p3) }
  0x18   : > { %v168_v2 = vld [vmem:[%s130_s30 + $0x20] sm:$0xff] (%p43_p3)  ;;  %165 = vst [vmem:[%s126_s3] sm:$0xff] (%p43_p3), %v164_v0  ;;  %167 = vst [vmem:[%s126_s3 + $0x8] sm:$0xff] (%p43_p3), %v166_v1  ;;  %v170_v3 = vld [vmem:[%s130_s30 + $0x30] sm:$0xff] (%p43_p3) }
  0x19   : > { %169 = vst [vmem:[%s126_s3 + $0x10] sm:$0xff] %v168_v2  ;;  %171 = vst [vmem:[%s126_s3 + $0x18] sm:$0xff] %v170_v3 }
  0x1a PF: > { %p405_p7 = scmp.ge.s32.totalorder %s528_s15, 1  ;;  %p176_p8 = scmp.lt.s32.totalorder %s528_s15, 5 }
  0x1c   : > { %p177_p9 = pnand %p405_p7, %p176_p8 }
  0x1d   : > { %s183_s4 = sand.u32 (!%p177_p9), 1, %s504_s9   ;;  %p209_p10 = scmp.lt.s32.totalorder (!%p177_p9), %s516_s12, 1 }
  0x1e   : > { %180 = sbr.rel (%p177_p9) target bundleno = 207 (0xcf), region = 58  ;;  %s406_s5 = sshll.u32 (!%p177_p9), %s183_s4, 5 }
  0x1f   : > { %s185_s23 = scalar_lea.vmem (!%p177_p9), [#allocation2], %s406_s5  ;;  %p411_p11 = scmp.ne.s32.totalorder (!%p177_p9), %s512_s11, 0 }
  0x25   : > { %s692_s12 = smov (!%p209_p10, %s516_s12), 1  ;;  %222 = sbr.rel (%p411_p11) target bundleno = 44 (0x2c), region = 66 }
  0x26   : > { %s415_s6 = sshll.u32 %s692_s12, 5  ;;  %vm223_vm0 = vcmask (!%p411_p11), 7168   ;;  %v530_v4 = vmov (!%p411_p11), 0.0  }
  0x27   : > { %s614_s18 = scalar_lea.vmem %s677_s1, %s415_s6  ;;  %s619_s21 = scalar_lea.vmem %s678_s2, %s415_s6 }
  0x28   : > { %224 = vst.msk [vmem:[%s614_s18] sm:$0xff] (!%p411_p11), %vm223_vm0, %v530_v4  ;;  %225 = vst.msk [vmem:[%s614_s18 + $0x8] sm:$0xff] (!%p411_p11), %vm223_vm0, %v530_v4 }
  0x29   : > { %226 = vst.msk [vmem:[%s614_s18 + $0x10] sm:$0xff] (!%p411_p11), %vm223_vm0, %v530_v4  ;;  %227 = vst.msk [vmem:[%s614_s18 + $0x18] sm:$0xff] (!%p411_p11), %vm223_vm0, %v530_v4 }
  0x2a   : > { %228 = vst.msk [vmem:[%s619_s21] sm:$0xff] (!%p411_p11), %vm223_vm0, %v530_v4  ;;  %229 = vst.msk [vmem:[%s619_s21 + $0x8] sm:$0xff] (!%p411_p11), %vm223_vm0, %v530_v4 }
  0x2b   : > { %230 = vst.msk [vmem:[%s619_s21 + $0x10] sm:$0xff] (!%p411_p11), %vm223_vm0, %v530_v4  ;;  %231 = vst.msk [vmem:[%s619_s21 + $0x18] sm:$0xff] (!%p411_p11), %vm223_vm0, %v530_v4 }
  0x2c PF: > { %s412_s9 = sshll.u32 %s512_s11, 7  ;;  %v238_v5 = vlaneseq  ;;  %v234_v6 = vld [vmem:[%s185_s23 + $0x10] sm:$0xff]  ;;  %v232_v9 = vld [vmem:[%s185_s23] sm:$0xff]  ;;  %v235_v10 = vld [vmem:[%s185_s23 + $0x18] sm:$0xff]  ;;  %vm262_vm2 = vcmask 7168  }
  0x2d   : > { %s237_s12 = ssub.s32 200, %s412_s9  ;;  %v233_v11 = vld [vmem:[%s185_s23 + $0x8] sm:$0xff] }
  0x2e   : > { %v239_v7 = vand.u32 127, %v238_v5  ;;  %v240_v8 = vstv %s237_s12 }
  0x2f   : > { %v246_v21 = vld [vmem:[%s614_s18] sm:$0xff]  ;;  %v247_v27 = vld [vmem:[%s614_s18 + $0x8] sm:$0xff] }
  0x30   : > { %vm241_vm1 = vcmp.lt.s32.totalorder %v239_v7, %v240_v8  ;;  %v248_v20 = vld [vmem:[%s614_s18 + $0x10] sm:$0xff]  ;;  %v249_v26 = vld [vmem:[%s614_s18 + $0x18] sm:$0xff] }
  0x31   : > { %v244_v12 = vsel %vm241_vm1, %v234_v6, 0.0  ;;  %v242_v13 = vsel %vm241_vm1, %v232_v9, 0.0  ;;  %v245_v14 = vsel %vm241_vm1, %v235_v10, 0.0  ;;  %v243_v15 = vsel %vm241_vm1, %v233_v11, 0.0  ;;  %v268_v32 = vld [vmem:[%s619_s21 + $0x8] sm:$0xff]  ;;  %v267_v33 = vld [vmem:[%s619_s21] sm:$0xff] }
  0x32   : > { %254 = vadd.xlane.f32.xlu1 %v244_v12  ;;  %250 = vadd.xlane.f32.xlu0 %v242_v13  ;;  %v272_v16 = vmul.f32 %v243_v15, %v243_v15  ;;  %v271_v17 = vmul.f32 %v242_v13, %v242_v13  ;;  %v274_v18 = vmul.f32 %v245_v14, %v245_v14  ;;  %v270_v38 = vld [vmem:[%s619_s21 + $0x18] sm:$0xff]  ;;  %v269_v39 = vld [vmem:[%s619_s21 + $0x10] sm:$0xff] }
  0x33   : > { %v273_v19 = vmul.f32 %v244_v12, %v244_v12 }
  0x36   : > { %256 = vadd.xlane.f32.xlu1 %v245_v14  ;;  %252 = vadd.xlane.f32.xlu0 %v243_v15 }
  0x3a   : > { %277 = vadd.xlane.f32.xlu1 %v272_v16  ;;  %275 = vadd.xlane.f32.xlu0 %v271_v17 }
  0x3e   : > { %281 = vadd.xlane.f32.xlu1 %v274_v18  ;;  %279 = vadd.xlane.f32.xlu0 %v273_v19 }
  0xbf   : > { %v255_v22 = vpop.xlane.xlu1 %254  ;;  %v251_v23 = vpop.xlane.xlu0 %250 }
  0xc0   : > { %v260_v24 = vadd.f32 %v255_v22, %v248_v20  ;;  %v258_v25 = vadd.f32 %v251_v23, %v246_v21 }
  0xc2   : > { %265 = vst.msk [vmem:[%s614_s18 + $0x10] sm:$0xff] %vm262_vm2, %v260_v24  ;;  %263 = vst.msk [vmem:[%s614_s18] sm:$0xff] %vm262_vm2, %v258_v25 }
  0xc3   : > { %v257_v28 = vpop.xlane.xlu1 %256  ;;  %v253_v29 = vpop.xlane.xlu0 %252 }
  0xc4   : > { %v261_v30 = vadd.f32 %v257_v28, %v249_v26  ;;  %v259_v31 = vadd.f32 %v253_v29, %v247_v27 }
  0xc6   : > { %266 = vst.msk [vmem:[%s614_s18 + $0x18] sm:$0xff] %vm262_vm2, %v261_v30  ;;  %264 = vst.msk [vmem:[%s614_s18 + $0x8] sm:$0xff] %vm262_vm2, %v259_v31 }
  0xc7   : > { %v278_v34 = vpop.xlane.xlu1 %277  ;;  %v276_v35 = vpop.xlane.xlu0 %275 }
  0xc8   : > { %v284_v36 = vadd.f32 %v278_v34, %v268_v32  ;;  %v283_v37 = vadd.f32 %v276_v35, %v267_v33 }
  0xca   : > { %288 = vst.msk [vmem:[%s619_s21 + $0x8] sm:$0xff] %vm262_vm2, %v284_v36  ;;  %287 = vst.msk [vmem:[%s619_s21] sm:$0xff] %vm262_vm2, %v283_v37 }
  0xcb   : > { %v282_v40 = vpop.xlane.xlu1 %281  ;;  %v280_v41 = vpop.xlane.xlu0 %279 }
  0xcc   : > { %v286_v42 = vadd.f32 %v282_v40, %v270_v38  ;;  %v285_v43 = vadd.f32 %v280_v41, %v269_v39 }
  0xce   : > { %290 = vst.msk [vmem:[%s619_s21 + $0x18] sm:$0xff] %vm262_vm2, %v286_v42  ;;  %289 = vst.msk [vmem:[%s619_s21 + $0x10] sm:$0xff] %vm262_vm2, %v285_v43 }
  0xcf PF: > { %s13_s15 = sadd.s32 1, %s528_s15   ;;  %s679_s9 = smov %s508_s10 }
  0xd0   : > { %p10_p12 = scmp.ge.s32.totalorder %s13_s15, 6   ;;  %s680_s10 = smov %s597_s22 }
  0xd1   : > { %s681_s11 = smov %s520_s13  ;;  %s682_s12 = smov %s524_s14 }
  0xd2   : > { %s683_s13 = smov %s686_s16  ;;  %s684_s14 = smov %s690_s17 }
  0xd3   :  { %12 = sbr.rel (!%p10_p12) target bundleno = 4 (0x4), region = 113 }

// kernel: _lambda_.4
= control target key start
LH: loop header
LB: loop body
LE: loop exit
PB: predicated region body
PF: predicated region fallthrough
CT: control target
= control target key end

     0   :  { %s1115_s18 = smov 0   ;;  %s1117_s19 = smov 0   ;;  %s1344_s0 = inlined_call_operand.vmem [shape: f32[2,32,200], index: 0, kind: input, shape index: {}]   ;;  %s1345_s1 = inlined_call_operand.vmem [shape: f32[2,32,1], index: 1, kind: input, shape index: {}]   ;;  %s1346_s2 = inlined_call_operand.vmem [shape: f32[2,32,1], index: 2, kind: input, shape index: {}]   ;;  %s1347_s3 = inlined_call_operand.vmem [shape: f32[32,32], index: 3, kind: input, shape index: {}]   ;;  %s1348_s4 = inlined_call_operand.vmem [shape: f32[2,32,1], index: 4, kind: output, shape index: {0}]   ;;  %s1349_s5 = inlined_call_operand.vmem [shape: f32[2,32,1], index: 5, kind: output, shape index: {1}]  }
   0x1   :  { %s1119_s20 = smov 0   ;;  %s1121_s21 = smov 0  }
   0x2   :  { %s1123_s22 = smov 0   ;;  %s1125_s23 = smov 0  }
   0x3   :  { %s1127_s24 = smov 0  }
   0x4 LB: > { %s25_s25 = sadd.s32 1, %s1073_s22  ;;  %s28_s26 = sadd.s32 1, %s1077_s23  ;;  %s1081_s24 = sphi %s1127_s24, %s16_s24   ;;  %s1077_s23 = sphi %s1125_s23, %s1355_s23   ;;  %s1073_s22 = sphi %s1123_s22, %s1354_s22   ;;  %s1069_s21 = sphi %s1121_s21, %s1353_s21   ;;  %s1065_s20 = sphi %s1119_s20, %s1352_s20   ;;  %s1061_s19 = sphi %s1117_s19, %s1351_s19   ;;  %s1057_s18 = sphi %s1115_s18, %s1350_s18  }
   0x5   : > { %p26_p0 = scmp.ge.s32.totalorder %s25_s25, 2  ;;  %p44_p1 = scmp.ne.s32.totalorder %s1061_s19, %s1057_s18 }
   0x6   : > { %p45_p2 = scmp.eq.s32.totalorder %s1081_s24, 0  ;;  %s37_s30 = sadd.s32 1, %s1061_s19 }
   0x7   : > { %s1357_s25 = smov (%p26_p0, %s25_s25), 0  ;;  %s1359_s26 = smov (!%p26_p0, %s28_s26), %s1077_s23 }
   0x8   : > { %p46_p3 = por %p45_p2, %p44_p1  ;;  %p30_p4 = scmp.ge.s32.totalorder %s1359_s26, 2 }
   0x9   : > { %s33_s27 = ssub.s32 %s1073_s22, %s1357_s25  ;;  %p860_p6 = scmp.ge.s32.totalorder %s1081_s24, 4 }
   0xa   : > { %s1361_s26 = smov (%p30_p4, %s1359_s26), 0 }
   0xb   : > { %s32_s28 = ssub.s32 %s1077_s23, %s1361_s26  ;;  %198 = sbr.rel (%p860_p6) target bundleno = 26 (0x1a), region = 20 }
   0xc   : > { %s34_s29 = sor.u32 %s33_s27, %s32_s28 }
   0xd   : > { %p35_p5 = scmp.eq.s32.totalorder %s34_s29, 0 }
   0xf   : > { %s1166_s6 = scalar_select %p35_p5, %s1061_s19, %s37_s30  }
  0x12   : > { %201 = sbr.rel (!%p46_p3) target bundleno = 26 (0x1a), region = 24  ;;  %s203_s7 = sand.u32 (%p46_p3), 1, %s1061_s19  }
  0x13   : > { %s862_s8 = sshll.u32 (%p46_p3), %s1077_s23, 3  ;;  %s861_s9 = sshll.u32 (%p46_p3), %s203_s7, 5 }
  0x14   : > { %s207_s10 = sadd.s32 (%p46_p3), %s1073_s22, %s862_s8  ;;  %s205_s15 = scalar_lea.vmem (%p46_p3), [#allocation2], %s861_s9 }
  0x15   : > { %s863_s11 = sshll.u32 (%p46_p3), %s207_s10, 3 }
  0x16   : > { %s209_s14 = scalar_lea.vmem (%p46_p3), %s1344_s0, %s863_s11 }
  0x17   : > { %v243_v0 = vld [vmem:[%s209_s14] sm:$0xff] (%p46_p3)  ;;  %v245_v1 = vld [vmem:[%s209_s14 + $0x10] sm:$0xff] (%p46_p3) }
  0x18   : > { %v247_v2 = vld [vmem:[%s209_s14 + $0x20] sm:$0xff] (%p46_p3)  ;;  %244 = vst [vmem:[%s205_s15] sm:$0xff] (%p46_p3), %v243_v0  ;;  %246 = vst [vmem:[%s205_s15 + $0x8] sm:$0xff] (%p46_p3), %v245_v1  ;;  %v249_v3 = vld [vmem:[%s209_s14 + $0x30] sm:$0xff] (%p46_p3) }
  0x19   : > { %248 = vst [vmem:[%s205_s15 + $0x10] sm:$0xff] %v247_v2  ;;  %250 = vst [vmem:[%s205_s15 + $0x18] sm:$0xff] %v249_v3 }
  0x1a PF: > { %p864_p7 = scmp.ge.s32.totalorder %s1081_s24, 1  ;;  %p271_p8 = scmp.lt.s32.totalorder %s1081_s24, 5 }
  0x1c   : > { %p272_p9 = pnand %p864_p7, %p271_p8 }
  0x1d   : > { %s278_s16 = sand.u32 (!%p272_p9), 1, %s1057_s18   ;;  %p320_p10 = scmp.lt.s32.totalorder (!%p272_p9), %s1069_s21, 1 }
  0x1e   : > { %275 = sbr.rel (%p272_p9) target bundleno = 950 (0x3b6), region = 70  ;;  %s865_s17 = sshll.u32 (!%p272_p9), %s278_s16, 5 }
  0x1f   : > { %p874_p11 = scmp.ne.s32.totalorder (!%p272_p9), %s1065_s20, 0 }
  0x25   : > { %s1363_s21 = smov (!%p320_p10, %s1069_s21), 1  ;;  %343 = sbr.rel (%p874_p11) target bundleno = 45 (0x2d), region = 78 }
  0x26   : > { %s891_s27 = sshll.u32 %s1363_s21, 5  ;;  %s1198_s21 = scalar_lea.vmem [#allocation2], %s865_s17  ;;  %vm344_vm0 = vcmask (!%p874_p11), 7168   ;;  %v1083_v4 = vmov (!%p874_p11), 0.0  }
  0x27   : > { %s324_s30 = scalar_lea.vmem %s1345_s1, %s891_s27  ;;  %s1186_s9 = scalar_lea.vmem %s1346_s2, %s891_s27 }
  0x28   : > { %s1191_s12 = scalar_lea.vmem %s1348_s4, %s891_s27  ;;  %s1196_s14 = scalar_lea.vmem %s1349_s5, %s891_s27 }
  0x29   : > { %345 = vst.msk [vmem:[%s1191_s12] sm:$0xff] (!%p874_p11), %vm344_vm0, %v1083_v4  ;;  %346 = vst.msk [vmem:[%s1191_s12 + $0x8] sm:$0xff] (!%p874_p11), %vm344_vm0, %v1083_v4 }
  0x2a   : > { %347 = vst.msk [vmem:[%s1191_s12 + $0x10] sm:$0xff] (!%p874_p11), %vm344_vm0, %v1083_v4  ;;  %348 = vst.msk [vmem:[%s1191_s12 + $0x18] sm:$0xff] (!%p874_p11), %vm344_vm0, %v1083_v4 }
  0x2b   : > { %349 = vst.msk [vmem:[%s1196_s14] sm:$0xff] (!%p874_p11), %vm344_vm0, %v1083_v4  ;;  %350 = vst.msk [vmem:[%s1196_s14 + $0x8] sm:$0xff] (!%p874_p11), %vm344_vm0, %v1083_v4 }
  0x2c   : > { %351 = vst.msk [vmem:[%s1196_s14 + $0x10] sm:$0xff] %vm344_vm0, %v1083_v4  ;;  %352 = vst.msk [vmem:[%s1196_s14 + $0x18] sm:$0xff] %vm344_vm0, %v1083_v4 }
  0x2d PF: > { %v359_v5 = vld [vmem:[%s324_s30 + $0x10] sm:$0xff]  ;;  %v357_v6 = vld [vmem:[%s324_s30] sm:$0xff]  ;;  %v1084_v7 = vmov 0   ;;  %v360_v8 = vld [vmem:[%s324_s30 + $0x18] sm:$0xff]  ;;  %p875_p12 = scmp.eq.s32.totalorder %s1065_s20, 1 }
  0x2e   : > { %1026 = vset.pattern.permute.xlu1 %v1084_v7  ;;  %1025 = vset.pattern.permute.xlu0 %v1084_v7  ;;  %v358_v9 = vld [vmem:[%s324_s30 + $0x8] sm:$0xff]  ;;  %v385_v11 = vld [vmem:[%s1186_s9] sm:$0xff]  ;;  %v388_v12 = vld [vmem:[%s1186_s9 + $0x18] sm:$0xff]  ;;  %vm426_vm1 = vcmask (!%p875_p12), 261120   ;;  %vm540_vm2 = vcmask (!%p875_p12), 7168  }
  0x2f   : > { %373 = vperm.xlu1 %1026, %v359_v5   ;;  %363 = vperm.xlu0 %1025, %v357_v6   ;;  %v386_v10 = vld [vmem:[%s1186_s9 + $0x8] sm:$0xff]  ;;  %v387_v13 = vld [vmem:[%s1186_s9 + $0x10] sm:$0xff]  ;;  %v355_v22 = vld [vmem:[%s1198_s21 + $0x10] sm:$0xff] }
  0x30   : > { %v353_v16 = vld [vmem:[%s1198_s21] sm:$0xff]  ;;  %v354_v19 = vld [vmem:[%s1198_s21 + $0x8] sm:$0xff]  ;;  %v356_v23 = vld [vmem:[%s1198_s21 + $0x18] sm:$0xff] }
  0x31   : > { %v422_v40 = vld [vmem:[%s1347_s3] sm:$0xff] (!%p875_p12)  ;;  %v424_v41 = vld [vmem:[%s1347_s3 + $0x10] sm:$0xff] (!%p875_p12)  ;;  %v423_v42 = vld [vmem:[%s1347_s3 + $0x8] sm:$0xff] (!%p875_p12) }
  0x32   : > { %919 = vmatprep.mubr.msk.f32.mxu0 (!%p875_p12), %vm426_vm1, %v422_v40  ;;  %922 = vmatprep.mubr.msk.f32.mxu1 (!%p875_p12), %vm426_vm1, %v424_v41  ;;  %v425_v43 = vld [vmem:[%s1347_s3 + $0x18] sm:$0xff] (!%p875_p12)  ;;  %v525_v53 = vld [vmem:[%s1191_s12 + $0x8] sm:$0xff] (!%p875_p12)  ;;  %v526_v58 = vld [vmem:[%s1191_s12 + $0x10] sm:$0xff] (!%p875_p12) }
  0x33   : > { %378 = vperm.xlu1 %1026, %v360_v8   ;;  %368 = vperm.xlu0 %1025, %v358_v9   ;;  %v527_v52 = vld [vmem:[%s1191_s12 + $0x18] sm:$0xff] (!%p875_p12)  ;;  %v524_v59 = vld [vmem:[%s1191_s12] sm:$0xff] (!%p875_p12)  ;;  %v546_v0 = vld [vmem:[%s1196_s14 + $0x8] sm:$0xff] (!%p875_p12) }
  0x34   : > { %v545_v1 = vld [vmem:[%s1196_s14] sm:$0xff] (!%p875_p12)  ;;  %v548_v6 = vld [vmem:[%s1196_s14 + $0x18] sm:$0xff] (!%p875_p12)  ;;  %v547_v7 = vld [vmem:[%s1196_s14 + $0x10] sm:$0xff] (!%p875_p12) }
  0x37   : > { %396 = vperm.xlu1 %1026, %v386_v10   ;;  %391 = vperm.xlu0 %1025, %v385_v11  }
  0x3b   : > { %406 = vperm.xlu1 %1026, %v388_v12   ;;  %401 = vperm.xlu0 %1025, %v387_v13  }
  0xae   : > { %v374_v14 = vpop.permute.xlu1 %373  ;;  %v364_v15 = vpop.permute.xlu0 %363 }
  0xaf   : > { %v381_v20 = vmul.f32 %v364_v15, %v353_v16  ;;  %v383_v28 = vmul.f32 %v374_v14, %v355_v22 }
  0xb2   : > { %v379_v17 = vpop.permute.xlu1 %378  ;;  %v369_v18 = vpop.permute.xlu0 %368 }
  0xb3   : > { %v382_v21 = vmul.f32 %v369_v18, %v354_v19  ;;  %v384_v29 = vmul.f32 %v379_v17, %v356_v23 }
  0xb6   : > { %v397_v24 = vpop.permute.xlu1 %396  ;;  %v392_v25 = vpop.permute.xlu0 %391 }
  0xb7   : > { %v1217_v26 = vadd.f32 %v397_v24, %v382_v21  ;;  %v1219_v27 = vadd.f32 %v392_v25, %v381_v20  ;;  %421 = sbr.rel (%p875_p12) target bundleno = 566 (0x236), region = 82 }
  0xb9   : > { %v414_v30 = vmax.f32 %v1217_v26, 0.0  ;;  %v413_v31 = vmax.f32 %v1219_v27, 0.0 }
  0xba   : > { %v407_v32 = vpop.permute.xlu1 %406  ;;  %v402_v33 = vpop.permute.xlu0 %401 }
  0xbb   : > { %v1223_v34 = vadd.f32 %v407_v32, %v384_v29  ;;  %v1225_v35 = vadd.f32 %v402_v33, %v383_v28  ;;  %v939_v38 = vpack.c.bf16 (!%p875_p12), %v414_v30, %v413_v31 }
  0xbd   : > { %v416_v36 = vmax.f32 %v1223_v34, 0.0  ;;  %v415_v37 = vmax.f32 %v1225_v35, 0.0  ;;  %940 = vmatprep.subr.bf16.mxu0 (!%p875_p12), %v939_v38  ;;  %959 = vmatprep.subr.bf16.mxu1 (!%p875_p12), %v939_v38 }
  0xbe   : > { %942 = vmatpush3.bf16.msra.mxu0 %v939_v38  ;;  %961 = vmatpush3.bf16.msra.mxu1 %v939_v38 }
  0xbf   : > { %v943_v39 = vpack.c.bf16 %v416_v36, %v415_v37 }
  0xc1   : > { %944 = vmatprep.subr.bf16.mxu0 %v943_v39  ;;  %960 = vmatprep.subr.bf16.mxu1 %v943_v39 }
  0xc2   : > { %946 = vmatpush3.bf16.msra.mxu0 %v943_v39  ;;  %962 = vmatpush3.bf16.msra.mxu1 %v943_v39 }
  0xc5   : > { %920 = vmatmul.mubr.msk.f32.vlgmr.msra.gmra.mrb[0].mxu0 %vm426_vm1, %v423_v42  ;;  %923 = vmatmul.mubr.msk.f32.vlgmr.msra.gmra.mrb[0].mxu1 %vm426_vm1, %v425_v43 }
 0x198   : > { %v921_v44 = vpop.f32.mrb[0].mxu0  ;;  %v924_v45 = vpop.f32.mrb[0].mxu1 }
 0x199   : > { %534 = vadd.xlane.f32.xlu1 %v924_v45  ;;  %v515_v46 = vpop.f32.mrb[1].mxu1  ;;  %530 = vadd.xlane.f32.xlu0 %v921_v44  ;;  %v505_v47 = vpop.f32.mrb[1].mxu0  ;;  %v550_v49 = vmul.f32 %v921_v44, %v921_v44  ;;  %v552_v51 = vmul.f32 %v924_v45, %v924_v45 }
 0x19a   : > { %v549_v48 = vmul.f32 %v505_v47, %v505_v47  ;;  %v551_v50 = vmul.f32 %v515_v46, %v515_v46 }
 0x19d   : > { %532 = vadd.xlane.f32.xlu1 %v515_v46  ;;  %528 = vadd.xlane.f32.xlu0 %v505_v47 }
 0x1a1   : > { %555 = vadd.xlane.f32.xlu1 %v550_v49  ;;  %553 = vadd.xlane.f32.xlu0 %v549_v48 }
 0x1a5   : > { %559 = vadd.xlane.f32.xlu1 %v552_v51  ;;  %557 = vadd.xlane.f32.xlu0 %v551_v50 }
 0x226   : > { %v535_v54 = vpop.xlane.xlu1 %534  ;;  %v531_v55 = vpop.xlane.xlu0 %530 }
 0x227   : > { %v539_v56 = vadd.f32 %v535_v54, %v527_v52  ;;  %v537_v57 = vadd.f32 %v531_v55, %v525_v53 }
 0x229   : > { %544 = vst.msk [vmem:[%s1191_s12 + $0x18] sm:$0xff] %vm540_vm2, %v539_v56  ;;  %542 = vst.msk [vmem:[%s1191_s12 + $0x8] sm:$0xff] %vm540_vm2, %v537_v57 }
 0x22a   : > { %v533_v60 = vpop.xlane.xlu1 %532  ;;  %v529_v61 = vpop.xlane.xlu0 %528 }
 0x22b   : > { %v538_v62 = vadd.f32 %v533_v60, %v526_v58  ;;  %v536_v63 = vadd.f32 %v529_v61, %v524_v59 }
 0x22d   : > { %543 = vst.msk [vmem:[%s1191_s12 + $0x10] sm:$0xff] %vm540_vm2, %v538_v62  ;;  %541 = vst.msk [vmem:[%s1191_s12] sm:$0xff] %vm540_vm2, %v536_v63 }
 0x22e   : > { %v556_v2 = vpop.xlane.xlu1 %555  ;;  %v554_v3 = vpop.xlane.xlu0 %553 }
 0x22f   : > { %v562_v4 = vadd.f32 %v556_v2, %v546_v0  ;;  %v561_v5 = vadd.f32 %v554_v3, %v545_v1 }
 0x231   : > { %566 = vst.msk [vmem:[%s1196_s14 + $0x8] sm:$0xff] %vm540_vm2, %v562_v4  ;;  %565 = vst.msk [vmem:[%s1196_s14] sm:$0xff] %vm540_vm2, %v561_v5 }
 0x232   : > { %v560_v8 = vpop.xlane.xlu1 %559  ;;  %v558_v9 = vpop.xlane.xlu0 %557 }
 0x233   : > { %v564_v10 = vadd.f32 %v560_v8, %v548_v6  ;;  %v563_v11 = vadd.f32 %v558_v9, %v547_v7 }
 0x235   : > { %568 = vst.msk [vmem:[%s1196_s14 + $0x18] sm:$0xff] %vm540_vm2, %v564_v10  ;;  %567 = vst.msk [vmem:[%s1196_s14 + $0x10] sm:$0xff] %vm540_vm2, %v563_v11 }
 0x236 PF: > { %p880_p13 = scmp.ne.s32.totalorder %s1065_s20, 1 }
 0x237   : > { %v572_v12 = vlaneseq (!%p880_p13)  ;;  %v579_v13 = vld [vmem:[%s1347_s3] sm:$0xff] (!%p880_p13)  ;;  %vm583_vm3 = vcmask (!%p880_p13), 261120   ;;  %v581_v14 = vld [vmem:[%s1347_s3 + $0x10] sm:$0xff] (!%p880_p13)  ;;  %v947_v16 = vpack.c.bf16 (!%p880_p13), %v414_v30, %v413_v31  ;;  %v953_v17 = vpack.c.bf16 (!%p880_p13), %v416_v36, %v415_v37  ;;  %v580_v18 = vld [vmem:[%s1347_s3 + $0x8] sm:$0xff] (!%p880_p13) }
 0x238   : > { %571 = sbr.rel (%p880_p13) target bundleno = 950 (0x3b6), region = 86  ;;  %933 = vmatprep.mubr.msk.f32.mxu0 (!%p880_p13), %vm583_vm3, %v579_v13  ;;  %936 = vmatprep.mubr.msk.f32.mxu1 (!%p880_p13), %vm583_vm3, %v581_v14  ;;  %v582_v19 = vld [vmem:[%s1347_s3 + $0x18] sm:$0xff] (!%p880_p13)  ;;  %v682_v29 = vld [vmem:[%s1191_s12 + $0x8] sm:$0xff] (!%p880_p13)  ;;  %vm697_vm6 = vcmask (!%p880_p13), 7168   ;;  %v683_v34 = vld [vmem:[%s1191_s12 + $0x10] sm:$0xff] (!%p880_p13) }
 0x239   : > { %v573_v15 = vand.u32 (!%p880_p13), 127, %v572_v12  ;;  %v684_v28 = vld [vmem:[%s1191_s12 + $0x18] sm:$0xff] (!%p880_p13)  ;;  %v681_v35 = vld [vmem:[%s1191_s12] sm:$0xff] (!%p880_p13)  ;;  %v703_v40 = vld [vmem:[%s1196_s14 + $0x8] sm:$0xff] (!%p880_p13) }
 0x23a   : > { %v702_v41 = vld [vmem:[%s1196_s14] sm:$0xff] (!%p880_p13) }
 0x23b   : > { %vm574_vm4 = vcmp.lt.s32.totalorder (!%p880_p13), %v573_v15, 72 }
 0x23c   : > { %vm948_vm5 = vmpackc.low (!%p880_p13), %vm574_vm4, %vm574_vm4  ;;  %v705_v46 = vld [vmem:[%s1196_s14 + $0x18] sm:$0xff] (!%p880_p13)  ;;  %v704_v47 = vld [vmem:[%s1196_s14 + $0x10] sm:$0xff] (!%p880_p13) }
 0x23d   : > { %949 = vmatprep.subr.msk.bf16.mxu0 (!%p880_p13), %vm948_vm5, %v947_v16  ;;  %963 = vmatprep.subr.msk.bf16.mxu1 (!%p880_p13), %vm948_vm5, %v947_v16 }
 0x23e   : > { %952 = vmatpush3.bf16.msk.msra.mxu0 (!%p880_p13), %vm948_vm5, %v947_v16  ;;  %965 = vmatpush3.bf16.msk.msra.mxu1 (!%p880_p13), %vm948_vm5, %v947_v16 }
 0x23f   : > { %955 = vmatprep.subr.msk.bf16.mxu0 %vm948_vm5, %v953_v17  ;;  %964 = vmatprep.subr.msk.bf16.mxu1 %vm948_vm5, %v953_v17 }
 0x242   : > { %958 = vmatpush3.bf16.msk.msra.mxu0 %vm948_vm5, %v953_v17  ;;  %966 = vmatpush3.bf16.msk.msra.mxu1 %vm948_vm5, %v953_v17 }
 0x245   : > { %934 = vmatmul.mubr.msk.f32.vlgmr.msra.gmra.mrb[0].mxu0 %vm583_vm3, %v580_v18  ;;  %937 = vmatmul.mubr.msk.f32.vlgmr.msra.gmra.mrb[0].mxu1 %vm583_vm3, %v582_v19 }
 0x318   : > { %v935_v20 = vpop.f32.mrb[0].mxu0  ;;  %v938_v21 = vpop.f32.mrb[0].mxu1 }
 0x319   : > { %691 = vadd.xlane.f32.xlu1 %v938_v21  ;;  %v672_v22 = vpop.f32.mrb[1].mxu1  ;;  %687 = vadd.xlane.f32.xlu0 %v935_v20  ;;  %v662_v23 = vpop.f32.mrb[1].mxu0  ;;  %v707_v25 = vmul.f32 %v935_v20, %v935_v20  ;;  %v709_v27 = vmul.f32 %v938_v21, %v938_v21 }
 0x31a   : > { %v706_v24 = vmul.f32 %v662_v23, %v662_v23  ;;  %v708_v26 = vmul.f32 %v672_v22, %v672_v22 }
 0x31d   : > { %689 = vadd.xlane.f32.xlu1 %v672_v22  ;;  %685 = vadd.xlane.f32.xlu0 %v662_v23 }
 0x321   : > { %712 = vadd.xlane.f32.xlu1 %v707_v25  ;;  %710 = vadd.xlane.f32.xlu0 %v706_v24 }
 0x325   : > { %716 = vadd.xlane.f32.xlu1 %v709_v27  ;;  %714 = vadd.xlane.f32.xlu0 %v708_v26 }
 0x3a6   : > { %v692_v30 = vpop.xlane.xlu1 %691  ;;  %v688_v31 = vpop.xlane.xlu0 %687 }
 0x3a7   : > { %v696_v32 = vadd.f32 %v692_v30, %v684_v28  ;;  %v694_v33 = vadd.f32 %v688_v31, %v682_v29 }
 0x3a9   : > { %701 = vst.msk [vmem:[%s1191_s12 + $0x18] sm:$0xff] %vm697_vm6, %v696_v32  ;;  %699 = vst.msk [vmem:[%s1191_s12 + $0x8] sm:$0xff] %vm697_vm6, %v694_v33 }
 0x3aa   : > { %v690_v36 = vpop.xlane.xlu1 %689  ;;  %v686_v37 = vpop.xlane.xlu0 %685 }
 0x3ab   : > { %v695_v38 = vadd.f32 %v690_v36, %v683_v34  ;;  %v693_v39 = vadd.f32 %v686_v37, %v681_v35 }
 0x3ad   : > { %700 = vst.msk [vmem:[%s1191_s12 + $0x10] sm:$0xff] %vm697_vm6, %v695_v38  ;;  %698 = vst.msk [vmem:[%s1191_s12] sm:$0xff] %vm697_vm6, %v693_v39 }
 0x3ae   : > { %v713_v42 = vpop.xlane.xlu1 %712  ;;  %v711_v43 = vpop.xlane.xlu0 %710 }
 0x3af   : > { %v719_v44 = vadd.f32 %v713_v42, %v703_v40  ;;  %v718_v45 = vadd.f32 %v711_v43, %v702_v41 }
 0x3b1   : > { %723 = vst.msk [vmem:[%s1196_s14 + $0x8] sm:$0xff] %vm697_vm6, %v719_v44  ;;  %722 = vst.msk [vmem:[%s1196_s14] sm:$0xff] %vm697_vm6, %v718_v45 }
 0x3b2   : > { %v717_v48 = vpop.xlane.xlu1 %716  ;;  %v715_v49 = vpop.xlane.xlu0 %714 }
 0x3b3   : > { %v721_v50 = vadd.f32 %v717_v48, %v705_v46  ;;  %v720_v51 = vadd.f32 %v715_v49, %v704_v47 }
 0x3b5   : > { %725 = vst.msk [vmem:[%s1196_s14 + $0x18] sm:$0xff] %vm697_vm6, %v721_v50  ;;  %724 = vst.msk [vmem:[%s1196_s14 + $0x10] sm:$0xff] %vm697_vm6, %v720_v51 }
 0x3b6 PF: > { %s16_s24 = sadd.s32 1, %s1081_s24   ;;  %s1350_s18 = smov %s1061_s19 }
 0x3b7   : > { %p13_p0 = scmp.ge.s32.totalorder %s16_s24, 6   ;;  %s1351_s19 = smov %s1166_s6 }
 0x3b8   : > { %s1352_s20 = smov %s1073_s22  ;;  %s1353_s21 = smov %s1077_s23 }
 0x3b9   : > { %s1354_s22 = smov %s1357_s25  ;;  %s1355_s23 = smov %s1361_s26 }
 0x3ba   :  { %15 = sbr.rel (!%p13_p0) target bundleno = 4 (0x4), region = 139 }

// kernel: _lambda_.5
= control target key start
LH: loop header
LB: loop body
LE: loop exit
PB: predicated region body
PF: predicated region fallthrough
CT: control target
= control target key end

     0   :  { %s1508_s0 = inlined_call_operand.hbm [shape: f32[2,32,200], index: 0, kind: input, shape index: {}, may-alias: {0,7}]   ;;  %s1509_s1 = inlined_call_operand.vmem [shape: f32[2,32,1], index: 1, kind: input, shape index: {}]   ;;  %s1510_s2 = inlined_call_operand.vmem [shape: f32[2,32,1], index: 2, kind: input, shape index: {}]   ;;  %s1511_s3 = inlined_call_operand.vmem [shape: f32[2,32,1], index: 3, kind: input, shape index: {}]   ;;  %s1512_s4 = inlined_call_operand.vmem [shape: f32[2,32,1], index: 4, kind: input, shape index: {}]   ;;  %s1513_s5 = inlined_call_operand.vmem [shape: f32[32,32], index: 5, kind: input, shape index: {}]   ;;  %s1514_s6 = inlined_call_operand.vmem [shape: f32[32,32], index: 6, kind: input, shape index: {}]   ;;  %s1515_s7 = inlined_call_operand.hbm [shape: f32[2,32,200], index: 7, kind: output, shape index: {}, may-alias: {0,7}]  }
   0x1   :  { %1521 = sst [smem:[#allocation12_spill]] %s1515_s7 }
   0x2   :  { %12 = vsyncpa [#allocation3], 0 }
   0x3   :  { %14 = vsyncpa [#allocation3 + $0x1], 0 }
   0x4   :  { %15 = vsyncpa [#allocation4], 0 }
   0x5   :  { %17 = vsyncpa [#allocation4 + $0x1], 0  ;;  %s1241_s24 = smov 0   ;;  %s1243_s25 = smov 0  }
   0x6   :  { %s1245_s26 = smov 0   ;;  %s1247_s27 = smov 0  }
   0x7   :  { %s1249_s28 = smov 0   ;;  %s1251_s29 = smov 0  }
   0x8   :  { %s1253_s30 = smov 0   ;;  %s1255_s8 = smov 0  }
   0x9 LB: > { %1522 = sst [smem:[#allocation8_spill]] %s1162_s24  ;;  %s880_s9 = sadd.s32 4294967295, %s1190_s8   ;;  %s1190_s8 = sphi %s1255_s8, %s23_s8   ;;  %s1186_s30 = sphi %s1253_s30, %s1544_s30   ;;  %s1182_s29 = sphi %s1251_s29, %s1543_s29   ;;  %s1178_s28 = sphi %s1249_s28, %s1542_s28   ;;  %s1174_s27 = sphi %s1247_s27, %s1541_s27   ;;  %s1170_s26 = sphi %s1245_s26, %s1540_s26   ;;  %s1166_s25 = sphi %s1243_s25, %s1539_s25   ;;  %s1162_s24 = sphi %s1241_s24, %s1538_s24  }
   0xa   : > { %1523 = sst [smem:[#allocation9_spill]] %s1174_s27  ;;  %s881_s10 = sadd.s32 4294967294, %s1190_s8  }
   0xb   : > { %s32_s11 = sadd.s32 1, %s1182_s29  ;;  %s35_s12 = sadd.s32 1, %s1186_s30 }
   0xc   : > { %p33_p0 = scmp.ge.s32.totalorder %s32_s11, 2  ;;  %s44_s13 = sadd.s32 1, %s1170_s26 }
   0xd   : > { %p51_p1 = scmp.ne.s32.totalorder %s1170_s26, %s1166_s25  ;;  %p52_p2 = scmp.eq.s32.totalorder %s1190_s8, 0 }
   0xe   : > { %s1546_s11 = smov (%p33_p0, %s32_s11), 0  ;;  %s1548_s12 = smov (!%p33_p0, %s35_s12), %s1186_s30 }
   0xf   : > { %1524 = sst [smem:[#allocation10_spill]] %s1546_s11  ;;  %s40_s14 = ssub.s32 %s1182_s29, %s1546_s11 }
  0x10   : > { %p1294_p3 = por %p52_p2, %p51_p1  ;;  %p37_p4 = scmp.ge.s32.totalorder %s1548_s12, 2 }
  0x11   : > { %p57_p5 = scmp.ne.s32.totalorder %s1166_s25, %s1162_s24  ;;  %p58_p6 = scmp.eq.s32.totalorder %s880_s9, 0 }
  0x12   : > { %p229_p7 = scmp.eq.s32.totalorder %s880_s9, 3  ;;  %s1550_s12 = smov (%p37_p4, %s1548_s12), 0 }
  0x13   : > { %1526 = sst [smem:[#allocation11_spill]] %s1550_s12  ;;  %p1302_p8 = por %p58_p6, %p57_p5 }
  0x14   : > { %p1306_p9 = por %p229_p7, %p51_p1  ;;  %s39_s18 = ssub.s32 %s1186_s30, %s1550_s12 }
  0x15   : > { %p235_p10 = scmp.eq.s32.totalorder %s881_s10, 3  ;;  %s41_s19 = sor.u32 %s40_s14, %s39_s18 }
  0x16   : > { %s1528_s17 = scalar_select %p1306_p9, 1, 0 }
  0x17   : > { %p42_p11 = scmp.eq.s32.totalorder %s41_s19, 0  ;;  %p1312_p12 = por %p235_p10, %p57_p5 }
  0x18   : > { %p987_p13 = scmp.lt.s32.totalorder %s1190_s8, 4  ;;  %s261_s21 = sand.u32 1, %s1170_s26  }
  0x19   : > { %s1529_s20 = scalar_select %p1312_p12, 1, 0 }
  0x1a   : > { %s1319_s22 = scalar_select %p42_p11, %s1170_s26, %s44_s13  }
  0x1b   : > { %s884_s23 = sshll.u32 %s261_s21, 5  ;;  %s885_s9 = sshll.u32 %s1186_s30, 3 }
  0x1c   : > { %s270_s11 = sadd.s32 %s1182_s29, %s885_s9  ;;  %s265_s24 = scalar_lea.vmem [#allocation2], %s884_s23 }
  0x1d   : > { %s273_s7 = sshll.u32 %s265_s24, 4  ;;  %s886_s27 = sshll.u32 %s270_s11, 7  ;;  %s1323_s7 = int_to_ptr.vmem [resolvable:$true] %s273_s7 }
  0x1e   : > { %s1328_s14 = scalar_lea.hbm %s1508_s0, %s886_s27  ;;  %p1332_p0 = pnand %p987_p13, %p1294_p3 }
  0x1f   : > { %s1336_s24 = scalar_lea.sflag [#allocation3], %s261_s21  ;;  %s1062_s11 = scalar_lea.hbm %s1328_s14, 512 }
  0x20   : > { %p1063_p1 = scmp.ne.s32.totalorder %s1328_s14, %s1062_s11  ;;  %p1064_p2 = pneg %p1332_p0 }
  0x21   : > { %s1067_s15 = scalar_lea.hbm %s1508_s0, 2048  ;;  %p1068_p3 = scmp.lt.u32.totalorder %s1328_s14, %s1508_s0 }
  0x22   : > { %p1065_p4 = pnand %p1064_p2, %p1063_p1  ;;  %p1069_p6 = scmp.lt.u32.totalorder %s1067_s15, %s1062_s11 }
  0x23   : > { %p1071_p10 = scmp.lt.u32.totalorder %s1062_s11, %s1328_s14 }
  0x24   : > { %p1066_p5 = pneg %p1065_p4  ;;  %p1070_p7 = por %p1069_p6, %p1068_p3 }
  0x26   : > { %p1072_p11 = por %p1071_p10, %p1070_p7 }
  0x28   : > { %p1073_p13 = pnand %p1072_p11, %p1066_p5 }
  0x2a   : > { %1076 = shalt.err (!%p1073_p13)
}
  0x2b   : > { %s1077_s21 = scalar_lea.vmem %s1323_s7, 512  ;;  %s1192_s23 = smov [#allocation2]  }
  0x2c   : > { %p1078_p1 = scmp.ne.s32.totalorder %s1323_s7, %s1077_s21  ;;  %s1082_s9 = sshll.u32 %s1192_s23, 4  ;;  %s1083_s9 = int_to_ptr.vmem [resolvable:$false] %s1082_s9 }
  0x2d   : > { %s1084_s10 = scalar_lea.vmem %s1083_s9, 1024  ;;  %p1085_p9 = scmp.lt.s32.totalorder %s1323_s7, %s1083_s9 }
  0x2e   : > { %p1080_p4 = pnand %p1078_p1, %p1064_p2  ;;  %p1086_p3 = scmp.lt.s32.totalorder %s1084_s10, %s1077_s21 }
  0x30   : > { %p1081_p12 = pneg %p1080_p4  ;;  %p1087_p6 = por %p1086_p3, %p1085_p9 }
  0x32   : > { %p1088_p7 = pnand %p1087_p6, %p1081_p12 }
  0x34   : > { %1091 = shalt.err (!%p1088_p7)
}
  0x35   : > { %s1193_s11 = smov 256   ;;  %s1194_s27 = smov 128  }
  0x36   : > { %s1195_s12 = smov 8   ;;  %p887_p2 = scmp.ge.s32.totalorder %s1190_s8, 1 }
  0x37   : > { %982 = dma.hbm_to_vmem [thread:$0]  (!%p1332_p0), %s1328_s14, 512, %s1323_s7, %s1336_s24, %s1193_s11, %s1194_s27, %s1195_s12  }
  0x38   : > { %p313_p5 = scmp.lt.s32.totalorder %s1190_s8, 5 }
  0x3a   : > { %p314_p10 = pnand %p887_p2, %p313_p5 }
  0x3b   : > { %s1367_s15 = sand.u32 (!%p314_p10), 1, %s1166_s25  }
  0x3c   : > { %317 = sbr.rel (%p314_p10) target bundleno = 690 (0x2b2), region = 48  ;;  %s888_s18 = sshll.u32 (!%p314_p10), %s1367_s15, 5 }
  0x3d   : > { %s320_s19 = scalar_lea.sflag (!%p314_p10), [#allocation3], %s1367_s15  ;;  %s1373_s21 = scalar_lea.vmem (!%p314_p10), [#allocation2], %s888_s18 }
  0x43   : > { %1153 = dma.done.wait (%p1302_p8), %s320_s19, 512  }
  0x44   : > { %1155 = vsyncadd (%p1302_p8), %s320_s19, 4294966784  ;;  %p374_p9 = scmp.lt.s32.totalorder %s1178_s28, 1  ;;  %v1196_v0 = vmov 0   ;;  %v458_v13 = vld [vmem:[%s1513_s5] sm:$0xff]  ;;  %vm462_vm0 = vcmask 261120   ;;  %v1398_v18 = vld [vmem:[%s1373_s21] sm:$0xff] }
  0x45   : > { %1061 = vset.pattern.permute.xlu1 %v1196_v0  ;;  %1060 = vset.pattern.permute.xlu0 %v1196_v0  ;;  %v1402_v22 = vld [vmem:[%s1373_s21 + $0x8] sm:$0xff]  ;;  %v1406_v29 = vld [vmem:[%s1373_s21 + $0x18] sm:$0xff]  ;;  %v1409_v31 = vld [vmem:[%s1373_s21 + $0x10] sm:$0xff]  ;;  %s1531_s19 = sld [smem:[#allocation9_spill]]  ;;  %p1533_p12 = scmp.ne.s32.totalorder %s1528_s17, 0 }
  0x46   : > { %s375_s7 = scalar_select %p374_p9, %s1178_s28, 1  ;;  %939 = vmatprep.mubr.msk.f32.mxu0 %vm462_vm0, %v458_v13  ;;  %v459_v44 = vld [vmem:[%s1513_s5 + $0x8] sm:$0xff]  ;;  %v460_v45 = vld [vmem:[%s1513_s5 + $0x10] sm:$0xff]  ;;  %v461_v46 = vld [vmem:[%s1513_s5 + $0x18] sm:$0xff] }
  0x47   : > { %v620_v47 = vld [vmem:[%s1514_s6] sm:$0xff]  ;;  %s1197_s24 = smov [#allocation5]  }
  0x48   : > { %s911_s14 = sshll.u32 %s375_s7, 5  ;;  %953 = vmatprep.mubr.msk.f32.mxu1 %vm462_vm0, %v620_v47  ;;  %s730_s7 = scalar_lea.sflag [#allocation4], %s1367_s15 }
  0x49   : > { %s383_s23 = scalar_lea.vmem %s1510_s2, %s911_s14  ;;  %s378_s11 = scalar_lea.vmem %s1509_s1, %s911_s14 }
  0x4a   : > { %v426_v1 = vld [vmem:[%s383_s23] sm:$0xff]  ;;  %v427_v3 = vld [vmem:[%s383_s23 + $0x8] sm:$0xff]  ;;  %v401_v5 = vld [vmem:[%s378_s11 + $0x18] sm:$0xff]  ;;  %s388_s12 = scalar_lea.vmem %s1511_s3, %s911_s14  ;;  %s393_s13 = scalar_lea.vmem %s1512_s4, %s911_s14 }
  0x4b   : > { %v398_v2 = vld [vmem:[%s378_s11] sm:$0xff]  ;;  %432 = vperm.xlu1 %1061, %v426_v1   ;;  %v399_v4 = vld [vmem:[%s378_s11 + $0x8] sm:$0xff]  ;;  %v400_v6 = vld [vmem:[%s378_s11 + $0x10] sm:$0xff]  ;;  %s373_s11 = scalar_lea.vmem [#allocation5], %s888_s18  ;;  %s1532_s18 = sld [smem:[#allocation12_spill]] }
  0x4c   : > { %404 = vperm.xlu0 %1060, %v398_v2   ;;  %v429_v7 = vld [vmem:[%s383_s23 + $0x18] sm:$0xff]  ;;  %v428_v8 = vld [vmem:[%s383_s23 + $0x10] sm:$0xff]  ;;  %v561_v9 = vld [vmem:[%s388_s12 + $0x8] sm:$0xff]  ;;  %s907_s23 = sshll.u32 %s1178_s28, 3  ;;  %s744_s16 = sshll.u32 %s373_s11, 4  ;;  %s1447_s16 = int_to_ptr.vmem [resolvable:$true] %s744_s16 }
  0x4d   : > { %v560_v10 = vld [vmem:[%s388_s12] sm:$0xff]  ;;  %v589_v11 = vld [vmem:[%s393_s13 + $0x8] sm:$0xff]  ;;  %v563_v14 = vld [vmem:[%s388_s12 + $0x18] sm:$0xff]  ;;  %s741_s10 = sadd.s32 %s1531_s19, %s907_s23  ;;  %s1096_s9 = sshll.u32 %s1197_s24, 4  ;;  %s1097_s9 = int_to_ptr.vmem [resolvable:$false] %s1096_s9 }
  0x4e   : > { %v588_v12 = vld [vmem:[%s393_s13] sm:$0xff]  ;;  %v562_v15 = vld [vmem:[%s388_s12 + $0x10] sm:$0xff]  ;;  %v591_v16 = vld [vmem:[%s393_s13 + $0x18] sm:$0xff]  ;;  %s908_s27 = sshll.u32 %s741_s10, 7  ;;  %s1098_s21 = scalar_lea.vmem %s1097_s9, 1024 }
  0x4f   : > { %437 = vperm.xlu1 %1061, %v427_v3   ;;  %v590_v17 = vld [vmem:[%s393_s13 + $0x10] sm:$0xff]  ;;  %s1092_s13 = scalar_lea.vmem %s1447_s16, 512  ;;  %p1099_p13 = scmp.lt.s32.totalorder %s1447_s16, %s1097_s9 }
  0x50   : > { %409 = vperm.xlu0 %1060, %v399_v4   ;;  %p1093_p8 = scmp.ne.s32.totalorder %s1447_s16, %s1092_s13  ;;  %p1100_p1 = scmp.lt.s32.totalorder %s1098_s21, %s1092_s13 }
  0x51   : > { %s1453_s19 = scalar_lea.hbm %s1532_s18, %s908_s27 }
  0x52   : > { %p1094_p0 = pnand %p1093_p8, %p1533_p12  ;;  %p1101_p4 = por %p1100_p1, %p1099_p13 }
  0x53   : > { %419 = vperm.xlu1 %1061, %v401_v5  }
  0x54   : > { %414 = vperm.xlu0 %1060, %v400_v6   ;;  %p1095_p11 = pneg %p1094_p0 }
  0x56   : > { %p1102_p3 = pnand %p1101_p4, %p1095_p11 }
  0x57   : > { %447 = vperm.xlu1 %1061, %v429_v7  }
  0x58   : > { %442 = vperm.xlu0 %1060, %v428_v8  }
  0x5b   : > { %571 = vperm.xlu1 %1061, %v561_v9  }
  0x5c   : > { %566 = vperm.xlu0 %1060, %v560_v10   ;;  %v621_v10 = vld [vmem:[%s1514_s6 + $0x8] sm:$0xff] }
  0x5f   : > { %599 = vperm.xlu1 %1061, %v589_v11   ;;  %v622_v11 = vld [vmem:[%s1514_s6 + $0x10] sm:$0xff] }
  0x60   : > { %594 = vperm.xlu0 %1060, %v588_v12   ;;  %v623_v12 = vld [vmem:[%s1514_s6 + $0x18] sm:$0xff] }
  0x63   : > { %581 = vperm.xlu1 %1061, %v563_v14  }
  0x64   : > { %576 = vperm.xlu0 %1060, %v562_v15  }
  0x67   : > { %609 = vperm.xlu1 %1061, %v591_v16  }
  0x68   : > { %604 = vperm.xlu0 %1060, %v590_v17  }
  0xca   : > { %v433_v19 = vpop.permute.xlu1 %432 }
  0xcb   : > { %v405_v20 = vpop.permute.xlu0 %404 }
  0xcc   : > { %v422_v21 = vmul.f32 %v405_v20, %v1398_v18 }
  0xce   : > { %v438_v23 = vpop.permute.xlu1 %437  ;;  %v450_v25 = vadd.f32 %v433_v19, %v422_v21 }
  0xcf   : > { %v410_v24 = vpop.permute.xlu0 %409 }
  0xd0   : > { %v423_v26 = vmul.f32 %v410_v24, %v1402_v22  ;;  %v454_v32 = vmax.f32 %v450_v25, 0.0 }
  0xd2   : > { %v451_v27 = vadd.f32 %v438_v23, %v423_v26  ;;  %v420_v28 = vpop.permute.xlu1 %419 }
  0xd3   : > { %v415_v30 = vpop.permute.xlu0 %414  ;;  %v425_v34 = vmul.f32 %v420_v28, %v1406_v29 }
  0xd4   : > { %v455_v33 = vmax.f32 %v451_v27, 0.0  ;;  %v424_v35 = vmul.f32 %v415_v30, %v1409_v31 }
  0xd6   : > { %v959_v36 = vpack.c.bf16 %v455_v33, %v454_v32  ;;  %v448_v37 = vpop.permute.xlu1 %447 }
  0xd7   : > { %v443_v38 = vpop.permute.xlu0 %442  ;;  %v453_v39 = vadd.f32 %v448_v37, %v425_v34 }
  0xd8   : > { %v452_v40 = vadd.f32 %v443_v38, %v424_v35  ;;  %960 = vmatprep.subr.bf16.mxu0 %v959_v36 }
  0xd9   : > { %962 = vmatpush3.bf16.msra.mxu0 %v959_v36  ;;  %v457_v41 = vmax.f32 %v453_v39, 0.0 }
  0xda   : > { %v456_v42 = vmax.f32 %v452_v40, 0.0  ;;  %v572_v48 = vpop.permute.xlu1 %571 }
  0xdb   : > { %v567_v49 = vpop.permute.xlu0 %566 }
  0xdc   : > { %v963_v43 = vpack.c.bf16 %v457_v41, %v456_v42 }
  0xde   : > { %964 = vmatprep.subr.bf16.mxu0 %v963_v43  ;;  %v600_v50 = vpop.permute.xlu1 %599 }
  0xdf   : > { %966 = vmatpush3.bf16.msra.mxu0 %v963_v43  ;;  %v595_v51 = vpop.permute.xlu0 %594 }
  0xe2   : > { %940 = vmatmul.mubr.msk.f32.vlgmr.msra.gmra.mrb[0].mxu0 %vm462_vm0, %v459_v44  ;;  %v582_v52 = vpop.permute.xlu1 %581 }
  0xe3   : > { %942 = vmatprep.mubr.msk.f32.mxu0 %vm462_vm0, %v460_v45  ;;  %v577_v54 = vpop.permute.xlu0 %576 }
  0xe6   : > { %943 = vmatmul.mubr.msk.f32.gmra.mrb[2].mxu0 %vm462_vm0, %v461_v46  ;;  %v610_v0 = vpop.permute.xlu1 %609 }
  0xe7   : > { %v605_v3 = vpop.permute.xlu0 %604 }
 0x1b5   : > { %v941_v53 = vpop.f32.mrb[0].mxu0 }
 0x1b6   : > { %v585_v55 = vmul.f32 %v941_v53, %v572_v48  ;;  %v541_v56 = vpop.f32.mrb[1].mxu0 }
 0x1b7   : > { %v584_v57 = vmul.f32 %v567_v49, %v541_v56 }
 0x1b8   : > { %v613_v58 = vadd.f32 %v600_v50, %v585_v55 }
 0x1b9   : > { %v612_v59 = vadd.f32 %v595_v51, %v584_v57  ;;  %v944_v60 = vpop.f32.mrb[2].mxu0 }
 0x1ba   : > { %v617_v61 = vmax.f32 %v613_v58, 0.0  ;;  %v587_v62 = vmul.f32 %v944_v60, %v582_v52  ;;  %v551_v63 = vpop.f32.mrb[3].mxu0 }
 0x1bb   : > { %v616_v1 = vmax.f32 %v612_v59, 0.0  ;;  %v586_v2 = vmul.f32 %v577_v54, %v551_v63 }
 0x1bc   : > { %v615_v4 = vadd.f32 %v610_v0, %v587_v62 }
 0x1bd   : > { %v614_v5 = vadd.f32 %v605_v3, %v586_v2  ;;  %v967_v6 = vpack.c.bf16 %v617_v61, %v616_v1 }
 0x1be   : > { %v619_v7 = vmax.f32 %v615_v4, 0.0 }
 0x1bf   : > { %v618_v8 = vmax.f32 %v614_v5, 0.0  ;;  %968 = vmatprep.subr.bf16.mxu1 %v967_v6 }
 0x1c0   : > { %970 = vmatpush3.bf16.msra.mxu1 %v967_v6 }
 0x1c1   : > { %v971_v9 = vpack.c.bf16 %v619_v7, %v618_v8 }
 0x1c3   : > { %972 = vmatprep.subr.bf16.mxu1 %v971_v9 }
 0x1c4   : > { %974 = vmatpush3.bf16.msra.mxu1 %v971_v9 }
 0x1c7   : > { %954 = vmatmul.mubr.msk.f32.vlgmr.msra.gmra.mrb[0].mxu1 %vm462_vm0, %v621_v10 }
 0x1c8   : > { %956 = vmatprep.mubr.msk.f32.mxu1 %vm462_vm0, %v622_v11 }
 0x1cb   : > { %957 = vmatmul.mubr.msk.f32.gmra.mrb[2].mxu1 %vm462_vm0, %v623_v12 }
 0x29a   : > { %v955_v13 = vpop.f32.mrb[0].mxu1 }
 0x29b   : > { %v722_v14 = vadd.f32 %v955_v13, %v1402_v22  ;;  %v702_v15 = vpop.f32.mrb[1].mxu1 }
 0x29c   : > { %v721_v16 = vadd.f32 %v702_v15, %v1398_v18 }
 0x29d   : > { %726 = vst [vmem:[%s373_s11 + $0x8] sm:$0xff] %v722_v14 }
 0x29e   : > { %725 = vst [vmem:[%s373_s11] sm:$0xff] %v721_v16  ;;  %v958_v17 = vpop.f32.mrb[2].mxu1 }
 0x29f   : > { %v724_v19 = vadd.f32 %v958_v17, %v1406_v29  ;;  %v712_v20 = vpop.f32.mrb[3].mxu1 }
 0x2a0   : > { %v723_v21 = vadd.f32 %v712_v20, %v1409_v31 }
 0x2a1   : > { %728 = vst [vmem:[%s373_s11 + $0x18] sm:$0xff] %v724_v19 }
 0x2a2   : > { %727 = vst [vmem:[%s373_s11 + $0x10] sm:$0xff] %v723_v21 }
 0x2a3   : > { %1105 = shalt.err (!%p1102_p3)
}
 0x2a4   : > { %s1106_s14 = scalar_lea.hbm %s1453_s19, 512  ;;  %s1110_s11 = scalar_lea.hbm %s1532_s18, 2048 }
 0x2a5   : > { %p1107_p6 = scmp.ne.s32.totalorder %s1453_s19, %s1106_s14  ;;  %p1111_p5 = scmp.lt.u32.totalorder %s1453_s19, %s1532_s18 }
 0x2a6   : > { %p1112_p10 = scmp.lt.u32.totalorder %s1110_s11, %s1106_s14  ;;  %p1114_p8 = scmp.lt.u32.totalorder %s1106_s14, %s1453_s19 }
 0x2a7   : > { %p1108_p7 = pnand %p1107_p6, %p1533_p12 }
 0x2a8   : > { %p1113_p9 = por %p1112_p10, %p1111_p5 }
 0x2a9   : > { %p1109_p2 = pneg %p1108_p7 }
 0x2aa   : > { %p1115_p0 = por %p1114_p8, %p1113_p9 }
 0x2ac   : > { %p1116_p11 = pnand %p1115_p0, %p1109_p2 }
 0x2ae   : > { %1119 = shalt.err (!%p1116_p11)
}
 0x2af   : > { %s1198_s12 = smov 128   ;;  %s1199_s13 = smov 256  }
 0x2b0   : > { %s1200_s24 = smov 8  }
 0x2b1   : > { %977 = dma.vmem_to_hbm [thread:$0]  (%p1533_p12), %s1447_s16, 512, %s1453_s19, %s730_s7, %s1198_s12, %s1199_s13, %s1200_s24  }
 0x2b2 PF: > { %s1534_s9 = sld [smem:[#allocation8_spill]]  ;;  %p988_p13 = scmp.ge.s32.totalorder %s1190_s8, 2 }
 0x2b3   : > { %p1535_p1 = scmp.ne.s32.totalorder %s1529_s20, 0 }
 0x2b5   : > { %p984_p4 = pnand %p988_p13, %p1535_p1 }
 0x2b8   : > { %s759_s21 = sand.u32 1, %s1534_s9  }
 0x2b9   : > { %s760_s14 = scalar_lea.sflag [#allocation4], %s759_s21 }
 0x2ba   : > { %1157 = dma.done.wait (!%p984_p4), %s760_s14, 512  }
 0x2bb   : > { %1159 = vsyncadd (!%p984_p4), %s760_s14, 4294966784  ;;  %s23_s8 = sadd.s32 1, %s1190_s8   ;;  %s1536_s17 = sld [smem:[#allocation10_spill]] }
 0x2bc   : > { %p20_p3 = scmp.ge.s32.totalorder %s23_s8, 6   ;;  %s1537_s15 = sld [smem:[#allocation11_spill]] }
 0x2bd   : > { %s1538_s24 = smov %s1166_s25  ;;  %s1539_s25 = smov %s1170_s26 }
 0x2be   : > { %s1540_s26 = smov %s1319_s22  ;;  %s1541_s27 = smov %s1182_s29 }
 0x2bf   : > { %s1542_s28 = smov %s1186_s30  ;;  %22 = sbr.rel (!%p20_p3) target bundleno = 9 (0x9), region = 105 }
 0x2c1   : > { %s1543_s29 = smov %s1536_s17 }
 0x2c2   : > { %s1544_s30 = smov %s1537_s15 }
 0x2c6   :  { %765 = vsyncpa [#allocation3], 1 }
 0x2c7   :  { %767 = vsyncpa [#allocation3 + $0x1], 1 }
 0x2c8   :  { %768 = vsyncpa [#allocation4], 1 }
 0x2c9   :  { %770 = vsyncpa [#allocation4 + $0x1], 1 }

</bundles_post_ra>
